<compile_context>
chip_gen: v7x
topology: tpu7x:2x2x1
jax: 0.10.0
libtpu: 0.0.40
codegen_flags: <defaults>
</compile_context>

<pallas_src>
import functools
import math

import jax
import jax.numpy as jnp
from jax import lax
from jax.experimental import pallas as pl
from jax.experimental.pallas import tpu as pltpu

BN_EPS = 1e-5
_SQRT_HALF = math.sqrt(0.5)


def _feature_transformer_kernel(x_ref, wa_ref, wg_ref, ba_ref, bg_ref,
                                ga_ref, gg_ref, bta_ref, btg_ref, o_ref,
                                *, nrof_glu, batch, final_scale):
    """x_ref: [B, D] f32; wa/wg: [L, D, D] bf16; vectors: [L, D] f32."""
    inv_b = jnp.float32(1.0 / batch)

    # Running activation in "unscaled" form u_i = x_i / s^i (s = sqrt(0.5)).
    # The per-layer residual scale is folded into the host-prepared params;
    # one final multiply by s^L restores the original value.
    u = x_ref[...].astype(jnp.float32)

    for i in range(nrof_glu):                      # static unroll (L is small)
        ub = u.astype(jnp.bfloat16)                # bf16 operands -> native MXU

        # Pre-split GLU halves: two lane-dense [B, D] matmuls, f32 accumulate.
        za = jnp.dot(ub, wa_ref[i], preferred_element_type=jnp.float32)
        zg = jnp.dot(ub, wg_ref[i], preferred_element_type=jnp.float32)
        za = za + ba_ref[pl.ds(i, 1), :]           # [1, D] broadcast bias
        zg = zg + bg_ref[pl.ds(i, 1), :]

        # BatchNorm1d, training mode: biased batch statistics over batch dim.
        # Fused affine: scale = gamma * rsqrt(var + eps) is a [1, D] product.
        mean_a = jnp.sum(za, axis=0, keepdims=True) * inv_b
        da = za - mean_a
        var_a = jnp.sum(da * da, axis=0, keepdims=True) * inv_b
        a = da * (ga_ref[pl.ds(i, 1), :] * lax.rsqrt(var_a + BN_EPS)) \
            + bta_ref[pl.ds(i, 1), :]

        mean_g = jnp.sum(zg, axis=0, keepdims=True) * inv_b
        dg = zg - mean_g
        var_g = jnp.sum(dg * dg, axis=0, keepdims=True) * inv_b
        g = dg * (gg_ref[pl.ds(i, 1), :] * lax.rsqrt(var_g + BN_EPS)) \
            + btg_ref[pl.ds(i, 1), :]

        # GLU + residual; the sqrt(0.5) scale is folded into the params.
        u = u + a * jax.nn.sigmoid(g)

    o_ref[...] = (u * jnp.float32(final_scale)).astype(o_ref.dtype)


def _prepare_params(w_stack, b_stack, gamma_stack, beta_stack):
    """Host-side: split GLU halves, fold sqrt(0.5)^i into W / a-half affine,
    cast matmul weights to bf16."""
    L, D, two_d = w_stack.shape
    assert two_d == 2 * D
    layer_idx = jnp.arange(L, dtype=jnp.float32)
    w_scale = (_SQRT_HALF ** layer_idx)[:, None, None]          # s^i
    inv_scale = ((1.0 / _SQRT_HALF) ** layer_idx)[:, None]      # s^-i

    wa = (w_stack[:, :, :D] * w_scale).astype(jnp.bfloat16)     # [L, D, D]
    wg = (w_stack[:, :, D:] * w_scale).astype(jnp.bfloat16)
    ba = b_stack[:, :D].astype(jnp.float32)                     # [L, D]
    bg = b_stack[:, D:].astype(jnp.float32)
    ga = gamma_stack[:, :D].astype(jnp.float32) * inv_scale
    gg = gamma_stack[:, D:].astype(jnp.float32)
    bta = beta_stack[:, :D].astype(jnp.float32) * inv_scale
    btg = beta_stack[:, D:].astype(jnp.float32)
    return wa, wg, ba, bg, ga, gg, bta, btg


def feature_transformer(x, w_stack, b_stack, gamma_stack, beta_stack):
    """x: [B, D] f32; w_stack: [L, D, 2D] (pre-transposed, kernel does x @ W);
    b/gamma/beta stacks: [L, 2D]."""
    B, D = x.shape
    L = w_stack.shape[0]
    wa, wg, ba, bg, ga, gg, bta, btg = _prepare_params(
        w_stack, b_stack, gamma_stack, beta_stack)
    final_scale = _SQRT_HALF ** L

    kernel = functools.partial(_feature_transformer_kernel,
                               nrof_glu=L, batch=B, final_scale=final_scale)
    vspec = pl.BlockSpec(memory_space=pltpu.VMEM)

    # NOTE: for large B this call should be gridded over the batch with a
    # two-pass BN (accumulate sum / sum-sq per batch tile -- and across
    # TensorCores on v7x -- before normalizing) so it pipelines and fits the
    # 64 MiB (v7x) / 128 MiB (v5e, v6e) VMEM budget.  At these sizes everything
    # is VMEM-resident and a single ungridded call is optimal.
    return pl.pallas_call(
        kernel,
        out_shape=jax.ShapeDtypeStruct((B, D), x.dtype),
        in_specs=[vspec] * 9,
        out_specs=vspec,
        input_output_aliases={0: 0},      # output reuses x's HBM buffer
    )(x, wa, wg, ba, bg, ga, gg, bta, btg)


# ----------------------------------------------------------------------------
# Pure-JAX references
# ----------------------------------------------------------------------------
def feature_transformer_ref_f32(x, w_stack, b_stack, gamma_stack, beta_stack):
    """Plain f32 reference matching the PyTorch training-mode forward."""
    scale = jnp.float32(_SQRT_HALF)
    D = x.shape[1]
    out = x.astype(jnp.float32)
    for i in range(w_stack.shape[0]):
        z = out @ w_stack[i] + b_stack[i][None, :]
        mean = jnp.mean(z, axis=0, keepdims=True)
        var = jnp.mean((z - mean) ** 2, axis=0, keepdims=True)
        z_bn = (z - mean) / jnp.sqrt(var + BN_EPS) * gamma_stack[i][None, :] \
               + beta_stack[i][None, :]
        glu = z_bn[:, :D] * jax.nn.sigmoid(z_bn[:, D:])
        out = (out + glu) * scale
    return out


def feature_transformer_ref_kernel_math(x, wa, wg, ba, bg, ga, gg, bta, btg,
                                        final_scale):
    """Mirror of the exact math the kernel performs (bf16 matmul operands,
    f32 elsewhere, folded residual scale) -- for tight numerical checking."""
    u = x.astype(jnp.float32)
    for i in range(wa.shape[0]):
        ub = u.astype(jnp.bfloat16)
        za = jnp.dot(ub, wa[i], preferred_element_type=jnp.float32) + ba[i][None, :]
        zg = jnp.dot(ub, wg[i], preferred_element_type=jnp.float32) + bg[i][None, :]
        ma = jnp.mean(za, axis=0, keepdims=True)
        da = za - ma
        va = jnp.mean(da * da, axis=0, keepdims=True)
        a = da * (ga[i][None, :] * lax.rsqrt(va + BN_EPS)) + bta[i][None, :]
        mg = jnp.mean(zg, axis=0, keepdims=True)
        dg = zg - mg
        vg = jnp.mean(dg * dg, axis=0, keepdims=True)
        g = dg * (gg[i][None, :] * lax.rsqrt(vg + BN_EPS)) + btg[i][None, :]
        u = u + a * jax.nn.sigmoid(g)
    return u * jnp.float32(final_scale)


if __name__ == "__main__":
    # FeatureTransformer(nrof_glu=3, input_size=[128]*3, output_size=256).
    # D = 128 keeps the feature/lane dimension fully dense (see perf notes).
    B = 64          # batch (BatchNorm statistics dimension)
    D = 128         # running activation feature dim (lane-dense)
    OUT = 2 * D     # per-layer Linear output size (GLU input)
    L = 3           # nrof_glu

    key = jax.random.PRNGKey(0)
    kx, kw, kb = jax.random.split(key, 3)

    x = jax.random.normal(kx, (B, D), dtype=jnp.float32)

    # Xavier-uniform style deterministic init for Linear weights, stacked and
    # pre-transposed: [L, D, OUT] so the kernel does x @ W.
    bound_w = math.sqrt(6.0 / (D + OUT))
    w_stack = jax.random.uniform(kw, (L, D, OUT), jnp.float32,
                                 minval=-bound_w, maxval=bound_w)
    bound_b = 1.0 / math.sqrt(D)
    b_stack = jax.random.uniform(kb, (L, OUT), jnp.float32,
                                 minval=-bound_b, maxval=bound_b)
    # BatchNorm1d default affine init: weight=1, bias=0.
    gamma_stack = jnp.ones((L, OUT), jnp.float32)
    beta_stack = jnp.zeros((L, OUT), jnp.float32)

    out = feature_transformer(x, w_stack, b_stack, gamma_stack, beta_stack)
    out = jax.block_until_ready(out)
    assert out.shape == (B, D), out.shape

    # Tight check: pure-JAX mirror of the kernel's exact (bf16-matmul) math.
    prep = _prepare_params(w_stack, b_stack, gamma_stack, beta_stack)
    ref_mirror = feature_transformer_ref_kernel_math(
        x, *prep, final_scale=_SQRT_HALF ** L)
    assert jnp.allclose(out, ref_mirror, atol=1e-4, rtol=1e-4), \
        float(jnp.max(jnp.abs(out - ref_mirror)))

    # Looser check vs. the f32 PyTorch-semantics reference (bf16 matmul
    # operands loosen agreement slightly; accumulation stays f32).
    ref_f32 = feature_transformer_ref_f32(x, w_stack, b_stack, gamma_stack,
                                          beta_stack)
    assert jnp.allclose(out, ref_f32, atol=5e-2, rtol=5e-2), \
        float(jnp.max(jnp.abs(out - ref_f32)))

    print("KERNEL_OK")
</pallas_src>

<mosaic_0001>
module attributes {stable_mosaic.version = 11 : i64} {
  func.func @_feature_transformer_kernel(%arg0: memref<64x128xf32, #tpu.memory_space<vmem>>, %arg1: memref<3x128x128xbf16, #tpu.memory_space<vmem>>, %arg2: memref<3x128x128xbf16, #tpu.memory_space<vmem>>, %arg3: memref<3x128xf32, #tpu.memory_space<vmem>>, %arg4: memref<3x128xf32, #tpu.memory_space<vmem>>, %arg5: memref<3x128xf32, #tpu.memory_space<vmem>>, %arg6: memref<3x128xf32, #tpu.memory_space<vmem>>, %arg7: memref<3x128xf32, #tpu.memory_space<vmem>>, %arg8: memref<3x128xf32, #tpu.memory_space<vmem>>, %arg9: memref<64x128xf32, #tpu.memory_space<vmem>>) attributes {dimension_semantics = [], scalar_prefetch = 0 : i64, scratch_operands = 0 : i64, tpu.core_type = #tpu.core_type<tc>} {
    %c0 = arith.constant 0 : index
    %c0_0 = arith.constant 0 : index
    %0 = vector.load %arg0[%c0, %c0_0] : memref<64x128xf32, #tpu.memory_space<vmem>>, vector<64x128xf32>
    %1 = arith.truncf %0 : vector<64x128xf32> to vector<64x128xbf16>
    %c0_1 = arith.constant 0 : index
    %c0_2 = arith.constant 0 : index
    %c0_3 = arith.constant 0 : index
    %2 = vector.load %arg1[%c0_1, %c0_2, %c0_3] : memref<3x128x128xbf16, #tpu.memory_space<vmem>>, vector<1x128x128xbf16>
    %3 = vector.shape_cast %2 : vector<1x128x128xbf16> to vector<128x128xbf16>
    %cst = arith.constant dense<0.000000e+00> : vector<64x128xf32>
    %4 = tpu.matmul %1, %3, %cst {dimension_numbers = #tpu.dot_dimension_numbers<[1], [0], [0], [1], [0, 0, 1, 1], [], []>} : vector<64x128xbf16>, vector<128x128xbf16>, vector<64x128xf32> -> vector<64x128xf32>
    %c0_4 = arith.constant 0 : index
    %c0_5 = arith.constant 0 : index
    %c0_6 = arith.constant 0 : index
    %5 = vector.load %arg2[%c0_4, %c0_5, %c0_6] : memref<3x128x128xbf16, #tpu.memory_space<vmem>>, vector<1x128x128xbf16>
    %6 = vector.shape_cast %5 : vector<1x128x128xbf16> to vector<128x128xbf16>
    %cst_7 = arith.constant dense<0.000000e+00> : vector<64x128xf32>
    %7 = tpu.matmul %1, %6, %cst_7 {dimension_numbers = #tpu.dot_dimension_numbers<[1], [0], [0], [1], [0, 0, 1, 1], [], []>} : vector<64x128xbf16>, vector<128x128xbf16>, vector<64x128xf32> -> vector<64x128xf32>
    %c0_8 = arith.constant 0 : index
    %c0_9 = arith.constant 0 : index
    %8 = vector.load %arg3[%c0_8, %c0_9] : memref<3x128xf32, #tpu.memory_space<vmem>>, vector<1x128xf32>
    %9 = vector.broadcast %8 : vector<1x128xf32> to vector<64x128xf32>
    %10 = arith.addf %4, %9 : vector<64x128xf32>
    %c0_10 = arith.constant 0 : index
    %c0_11 = arith.constant 0 : index
    %11 = vector.load %arg4[%c0_10, %c0_11] : memref<3x128xf32, #tpu.memory_space<vmem>>, vector<1x128xf32>
    %12 = vector.broadcast %11 : vector<1x128xf32> to vector<64x128xf32>
    %13 = arith.addf %7, %12 : vector<64x128xf32>
    %cst_12 = arith.constant dense<0.000000e+00> : vector<128xf32>
    %14 = vector.multi_reduction <add>, %10, %cst_12 [0] : vector<64x128xf32> to vector<128xf32>
    %15 = vector.shape_cast %14 : vector<128xf32> to vector<1x128xf32>
    %cst_13 = arith.constant 1.562500e-02 : f32
    %16 = vector.broadcast %cst_13 : f32 to vector<1x128xf32>
    %17 = arith.mulf %15, %16 : vector<1x128xf32>
    %18 = vector.broadcast %17 : vector<1x128xf32> to vector<64x128xf32>
    %19 = arith.subf %10, %18 : vector<64x128xf32>
    %20 = arith.mulf %19, %19 : vector<64x128xf32>
    %cst_14 = arith.constant dense<0.000000e+00> : vector<128xf32>
    %21 = vector.multi_reduction <add>, %20, %cst_14 [0] : vector<64x128xf32> to vector<128xf32>
    %22 = vector.shape_cast %21 : vector<128xf32> to vector<1x128xf32>
    %cst_15 = arith.constant 1.562500e-02 : f32
    %23 = vector.broadcast %cst_15 : f32 to vector<1x128xf32>
    %24 = arith.mulf %22, %23 : vector<1x128xf32>
    %c0_16 = arith.constant 0 : index
    %c0_17 = arith.constant 0 : index
    %25 = vector.load %arg5[%c0_16, %c0_17] : memref<3x128xf32, #tpu.memory_space<vmem>>, vector<1x128xf32>
    %cst_18 = arith.constant 9.99999974E-6 : f32
    %26 = vector.broadcast %cst_18 : f32 to vector<1x128xf32>
    %27 = arith.addf %24, %26 : vector<1x128xf32>
    %28 = math.rsqrt %27 : vector<1x128xf32>
    %29 = arith.mulf %25, %28 : vector<1x128xf32>
    %30 = vector.broadcast %29 : vector<1x128xf32> to vector<64x128xf32>
    %31 = arith.mulf %19, %30 : vector<64x128xf32>
    %c0_19 = arith.constant 0 : index
    %c0_20 = arith.constant 0 : index
    %32 = vector.load %arg7[%c0_19, %c0_20] : memref<3x128xf32, #tpu.memory_space<vmem>>, vector<1x128xf32>
    %33 = vector.broadcast %32 : vector<1x128xf32> to vector<64x128xf32>
    %34 = arith.addf %31, %33 : vector<64x128xf32>
    %cst_21 = arith.constant dense<0.000000e+00> : vector<128xf32>
    %35 = vector.multi_reduction <add>, %13, %cst_21 [0] : vector<64x128xf32> to vector<128xf32>
    %36 = vector.shape_cast %35 : vector<128xf32> to vector<1x128xf32>
    %cst_22 = arith.constant 1.562500e-02 : f32
    %37 = vector.broadcast %cst_22 : f32 to vector<1x128xf32>
    %38 = arith.mulf %36, %37 : vector<1x128xf32>
    %39 = vector.broadcast %38 : vector<1x128xf32> to vector<64x128xf32>
    %40 = arith.subf %13, %39 : vector<64x128xf32>
    %41 = arith.mulf %40, %40 : vector<64x128xf32>
    %cst_23 = arith.constant dense<0.000000e+00> : vector<128xf32>
    %42 = vector.multi_reduction <add>, %41, %cst_23 [0] : vector<64x128xf32> to vector<128xf32>
    %43 = vector.shape_cast %42 : vector<128xf32> to vector<1x128xf32>
    %cst_24 = arith.constant 1.562500e-02 : f32
    %44 = vector.broadcast %cst_24 : f32 to vector<1x128xf32>
    %45 = arith.mulf %43, %44 : vector<1x128xf32>
    %c0_25 = arith.constant 0 : index
    %c0_26 = arith.constant 0 : index
    %46 = vector.load %arg6[%c0_25, %c0_26] : memref<3x128xf32, #tpu.memory_space<vmem>>, vector<1x128xf32>
    %cst_27 = arith.constant 9.99999974E-6 : f32
    %47 = vector.broadcast %cst_27 : f32 to vector<1x128xf32>
    %48 = arith.addf %45, %47 : vector<1x128xf32>
    %49 = math.rsqrt %48 : vector<1x128xf32>
    %50 = arith.mulf %46, %49 : vector<1x128xf32>
    %51 = vector.broadcast %50 : vector<1x128xf32> to vector<64x128xf32>
    %52 = arith.mulf %40, %51 : vector<64x128xf32>
    %c0_28 = arith.constant 0 : index
    %c0_29 = arith.constant 0 : index
    %53 = vector.load %arg8[%c0_28, %c0_29] : memref<3x128xf32, #tpu.memory_space<vmem>>, vector<1x128xf32>
    %54 = vector.broadcast %53 : vector<1x128xf32> to vector<64x128xf32>
    %55 = arith.addf %52, %54 : vector<64x128xf32>
    %56 = arith.negf %55 : vector<64x128xf32>
    %57 = math.exp %56 : vector<64x128xf32>
    %cst_30 = arith.constant 1.000000e+00 : f32
    %58 = vector.broadcast %cst_30 : f32 to vector<64x128xf32>
    %59 = arith.addf %58, %57 : vector<64x128xf32>
    %60 = arith.divf %58, %59 : vector<64x128xf32>
    %61 = arith.mulf %34, %60 : vector<64x128xf32>
    %62 = arith.addf %0, %61 : vector<64x128xf32>
    %63 = arith.truncf %62 : vector<64x128xf32> to vector<64x128xbf16>
    %c1 = arith.constant 1 : index
    %c0_31 = arith.constant 0 : index
    %c0_32 = arith.constant 0 : index
    %64 = vector.load %arg1[%c1, %c0_31, %c0_32] : memref<3x128x128xbf16, #tpu.memory_space<vmem>>, vector<1x128x128xbf16>
    %65 = vector.shape_cast %64 : vector<1x128x128xbf16> to vector<128x128xbf16>
    %cst_33 = arith.constant dense<0.000000e+00> : vector<64x128xf32>
    %66 = tpu.matmul %63, %65, %cst_33 {dimension_numbers = #tpu.dot_dimension_numbers<[1], [0], [0], [1], [0, 0, 1, 1], [], []>} : vector<64x128xbf16>, vector<128x128xbf16>, vector<64x128xf32> -> vector<64x128xf32>
    %c1_34 = arith.constant 1 : index
    %c0_35 = arith.constant 0 : index
    %c0_36 = arith.constant 0 : index
    %67 = vector.load %arg2[%c1_34, %c0_35, %c0_36] : memref<3x128x128xbf16, #tpu.memory_space<vmem>>, vector<1x128x128xbf16>
    %68 = vector.shape_cast %67 : vector<1x128x128xbf16> to vector<128x128xbf16>
    %cst_37 = arith.constant dense<0.000000e+00> : vector<64x128xf32>
    %69 = tpu.matmul %63, %68, %cst_37 {dimension_numbers = #tpu.dot_dimension_numbers<[1], [0], [0], [1], [0, 0, 1, 1], [], []>} : vector<64x128xbf16>, vector<128x128xbf16>, vector<64x128xf32> -> vector<64x128xf32>
    %c1_38 = arith.constant 1 : index
    %c0_39 = arith.constant 0 : index
    %70 = vector.load %arg3[%c1_38, %c0_39] : memref<3x128xf32, #tpu.memory_space<vmem>>, vector<1x128xf32>
    %71 = vector.broadcast %70 : vector<1x128xf32> to vector<64x128xf32>
    %72 = arith.addf %66, %71 : vector<64x128xf32>
    %c1_40 = arith.constant 1 : index
    %c0_41 = arith.constant 0 : index
    %73 = vector.load %arg4[%c1_40, %c0_41] : memref<3x128xf32, #tpu.memory_space<vmem>>, vector<1x128xf32>
    %74 = vector.broadcast %73 : vector<1x128xf32> to vector<64x128xf32>
    %75 = arith.addf %69, %74 : vector<64x128xf32>
    %cst_42 = arith.constant dense<0.000000e+00> : vector<128xf32>
    %76 = vector.multi_reduction <add>, %72, %cst_42 [0] : vector<64x128xf32> to vector<128xf32>
    %77 = vector.shape_cast %76 : vector<128xf32> to vector<1x128xf32>
    %cst_43 = arith.constant 1.562500e-02 : f32
    %78 = vector.broadcast %cst_43 : f32 to vector<1x128xf32>
    %79 = arith.mulf %77, %78 : vector<1x128xf32>
    %80 = vector.broadcast %79 : vector<1x128xf32> to vector<64x128xf32>
    %81 = arith.subf %72, %80 : vector<64x128xf32>
    %82 = arith.mulf %81, %81 : vector<64x128xf32>
    %cst_44 = arith.constant dense<0.000000e+00> : vector<128xf32>
    %83 = vector.multi_reduction <add>, %82, %cst_44 [0] : vector<64x128xf32> to vector<128xf32>
    %84 = vector.shape_cast %83 : vector<128xf32> to vector<1x128xf32>
    %cst_45 = arith.constant 1.562500e-02 : f32
    %85 = vector.broadcast %cst_45 : f32 to vector<1x128xf32>
    %86 = arith.mulf %84, %85 : vector<1x128xf32>
    %c1_46 = arith.constant 1 : index
    %c0_47 = arith.constant 0 : index
    %87 = vector.load %arg5[%c1_46, %c0_47] : memref<3x128xf32, #tpu.memory_space<vmem>>, vector<1x128xf32>
    %cst_48 = arith.constant 9.99999974E-6 : f32
    %88 = vector.broadcast %cst_48 : f32 to vector<1x128xf32>
    %89 = arith.addf %86, %88 : vector<1x128xf32>
    %90 = math.rsqrt %89 : vector<1x128xf32>
    %91 = arith.mulf %87, %90 : vector<1x128xf32>
    %92 = vector.broadcast %91 : vector<1x128xf32> to vector<64x128xf32>
    %93 = arith.mulf %81, %92 : vector<64x128xf32>
    %c1_49 = arith.constant 1 : index
    %c0_50 = arith.constant 0 : index
    %94 = vector.load %arg7[%c1_49, %c0_50] : memref<3x128xf32, #tpu.memory_space<vmem>>, vector<1x128xf32>
    %95 = vector.broadcast %94 : vector<1x128xf32> to vector<64x128xf32>
    %96 = arith.addf %93, %95 : vector<64x128xf32>
    %cst_51 = arith.constant dense<0.000000e+00> : vector<128xf32>
    %97 = vector.multi_reduction <add>, %75, %cst_51 [0] : vector<64x128xf32> to vector<128xf32>
    %98 = vector.shape_cast %97 : vector<128xf32> to vector<1x128xf32>
    %cst_52 = arith.constant 1.562500e-02 : f32
    %99 = vector.broadcast %cst_52 : f32 to vector<1x128xf32>
    %100 = arith.mulf %98, %99 : vector<1x128xf32>
    %101 = vector.broadcast %100 : vector<1x128xf32> to vector<64x128xf32>
    %102 = arith.subf %75, %101 : vector<64x128xf32>
    %103 = arith.mulf %102, %102 : vector<64x128xf32>
    %cst_53 = arith.constant dense<0.000000e+00> : vector<128xf32>
    %104 = vector.multi_reduction <add>, %103, %cst_53 [0] : vector<64x128xf32> to vector<128xf32>
    %105 = vector.shape_cast %104 : vector<128xf32> to vector<1x128xf32>
    %cst_54 = arith.constant 1.562500e-02 : f32
    %106 = vector.broadcast %cst_54 : f32 to vector<1x128xf32>
    %107 = arith.mulf %105, %106 : vector<1x128xf32>
    %c1_55 = arith.constant 1 : index
    %c0_56 = arith.constant 0 : index
    %108 = vector.load %arg6[%c1_55, %c0_56] : memref<3x128xf32, #tpu.memory_space<vmem>>, vector<1x128xf32>
    %cst_57 = arith.constant 9.99999974E-6 : f32
    %109 = vector.broadcast %cst_57 : f32 to vector<1x128xf32>
    %110 = arith.addf %107, %109 : vector<1x128xf32>
    %111 = math.rsqrt %110 : vector<1x128xf32>
    %112 = arith.mulf %108, %111 : vector<1x128xf32>
    %113 = vector.broadcast %112 : vector<1x128xf32> to vector<64x128xf32>
    %114 = arith.mulf %102, %113 : vector<64x128xf32>
    %c1_58 = arith.constant 1 : index
    %c0_59 = arith.constant 0 : index
    %115 = vector.load %arg8[%c1_58, %c0_59] : memref<3x128xf32, #tpu.memory_space<vmem>>, vector<1x128xf32>
    %116 = vector.broadcast %115 : vector<1x128xf32> to vector<64x128xf32>
    %117 = arith.addf %114, %116 : vector<64x128xf32>
    %118 = arith.negf %117 : vector<64x128xf32>
    %119 = math.exp %118 : vector<64x128xf32>
    %cst_60 = arith.constant 1.000000e+00 : f32
    %120 = vector.broadcast %cst_60 : f32 to vector<64x128xf32>
    %121 = arith.addf %120, %119 : vector<64x128xf32>
    %122 = arith.divf %120, %121 : vector<64x128xf32>
    %123 = arith.mulf %96, %122 : vector<64x128xf32>
    %124 = arith.addf %62, %123 : vector<64x128xf32>
    %125 = arith.truncf %124 : vector<64x128xf32> to vector<64x128xbf16>
    %c2 = arith.constant 2 : index
    %c0_61 = arith.constant 0 : index
    %c0_62 = arith.constant 0 : index
    %126 = vector.load %arg1[%c2, %c0_61, %c0_62] : memref<3x128x128xbf16, #tpu.memory_space<vmem>>, vector<1x128x128xbf16>
    %127 = vector.shape_cast %126 : vector<1x128x128xbf16> to vector<128x128xbf16>
    %cst_63 = arith.constant dense<0.000000e+00> : vector<64x128xf32>
    %128 = tpu.matmul %125, %127, %cst_63 {dimension_numbers = #tpu.dot_dimension_numbers<[1], [0], [0], [1], [0, 0, 1, 1], [], []>} : vector<64x128xbf16>, vector<128x128xbf16>, vector<64x128xf32> -> vector<64x128xf32>
    %c2_64 = arith.constant 2 : index
    %c0_65 = arith.constant 0 : index
    %c0_66 = arith.constant 0 : index
    %129 = vector.load %arg2[%c2_64, %c0_65, %c0_66] : memref<3x128x128xbf16, #tpu.memory_space<vmem>>, vector<1x128x128xbf16>
    %130 = vector.shape_cast %129 : vector<1x128x128xbf16> to vector<128x128xbf16>
    %cst_67 = arith.constant dense<0.000000e+00> : vector<64x128xf32>
    %131 = tpu.matmul %125, %130, %cst_67 {dimension_numbers = #tpu.dot_dimension_numbers<[1], [0], [0], [1], [0, 0, 1, 1], [], []>} : vector<64x128xbf16>, vector<128x128xbf16>, vector<64x128xf32> -> vector<64x128xf32>
    %c2_68 = arith.constant 2 : index
    %c0_69 = arith.constant 0 : index
    %132 = vector.load %arg3[%c2_68, %c0_69] : memref<3x128xf32, #tpu.memory_space<vmem>>, vector<1x128xf32>
    %133 = vector.broadcast %132 : vector<1x128xf32> to vector<64x128xf32>
    %134 = arith.addf %128, %133 : vector<64x128xf32>
    %c2_70 = arith.constant 2 : index
    %c0_71 = arith.constant 0 : index
    %135 = vector.load %arg4[%c2_70, %c0_71] : memref<3x128xf32, #tpu.memory_space<vmem>>, vector<1x128xf32>
    %136 = vector.broadcast %135 : vector<1x128xf32> to vector<64x128xf32>
    %137 = arith.addf %131, %136 : vector<64x128xf32>
    %cst_72 = arith.constant dense<0.000000e+00> : vector<128xf32>
    %138 = vector.multi_reduction <add>, %134, %cst_72 [0] : vector<64x128xf32> to vector<128xf32>
    %139 = vector.shape_cast %138 : vector<128xf32> to vector<1x128xf32>
    %cst_73 = arith.constant 1.562500e-02 : f32
    %140 = vector.broadcast %cst_73 : f32 to vector<1x128xf32>
    %141 = arith.mulf %139, %140 : vector<1x128xf32>
    %142 = vector.broadcast %141 : vector<1x128xf32> to vector<64x128xf32>
    %143 = arith.subf %134, %142 : vector<64x128xf32>
    %144 = arith.mulf %143, %143 : vector<64x128xf32>
    %cst_74 = arith.constant dense<0.000000e+00> : vector<128xf32>
    %145 = vector.multi_reduction <add>, %144, %cst_74 [0] : vector<64x128xf32> to vector<128xf32>
    %146 = vector.shape_cast %145 : vector<128xf32> to vector<1x128xf32>
    %cst_75 = arith.constant 1.562500e-02 : f32
    %147 = vector.broadcast %cst_75 : f32 to vector<1x128xf32>
    %148 = arith.mulf %146, %147 : vector<1x128xf32>
    %c2_76 = arith.constant 2 : index
    %c0_77 = arith.constant 0 : index
    %149 = vector.load %arg5[%c2_76, %c0_77] : memref<3x128xf32, #tpu.memory_space<vmem>>, vector<1x128xf32>
    %cst_78 = arith.constant 9.99999974E-6 : f32
    %150 = vector.broadcast %cst_78 : f32 to vector<1x128xf32>
    %151 = arith.addf %148, %150 : vector<1x128xf32>
    %152 = math.rsqrt %151 : vector<1x128xf32>
    %153 = arith.mulf %149, %152 : vector<1x128xf32>
    %154 = vector.broadcast %153 : vector<1x128xf32> to vector<64x128xf32>
    %155 = arith.mulf %143, %154 : vector<64x128xf32>
    %c2_79 = arith.constant 2 : index
    %c0_80 = arith.constant 0 : index
    %156 = vector.load %arg7[%c2_79, %c0_80] : memref<3x128xf32, #tpu.memory_space<vmem>>, vector<1x128xf32>
    %157 = vector.broadcast %156 : vector<1x128xf32> to vector<64x128xf32>
    %158 = arith.addf %155, %157 : vector<64x128xf32>
    %cst_81 = arith.constant dense<0.000000e+00> : vector<128xf32>
    %159 = vector.multi_reduction <add>, %137, %cst_81 [0] : vector<64x128xf32> to vector<128xf32>
    %160 = vector.shape_cast %159 : vector<128xf32> to vector<1x128xf32>
    %cst_82 = arith.constant 1.562500e-02 : f32
    %161 = vector.broadcast %cst_82 : f32 to vector<1x128xf32>
    %162 = arith.mulf %160, %161 : vector<1x128xf32>
    %163 = vector.broadcast %162 : vector<1x128xf32> to vector<64x128xf32>
    %164 = arith.subf %137, %163 : vector<64x128xf32>
    %165 = arith.mulf %164, %164 : vector<64x128xf32>
    %cst_83 = arith.constant dense<0.000000e+00> : vector<128xf32>
    %166 = vector.multi_reduction <add>, %165, %cst_83 [0] : vector<64x128xf32> to vector<128xf32>
    %167 = vector.shape_cast %166 : vector<128xf32> to vector<1x128xf32>
    %cst_84 = arith.constant 1.562500e-02 : f32
    %168 = vector.broadcast %cst_84 : f32 to vector<1x128xf32>
    %169 = arith.mulf %167, %168 : vector<1x128xf32>
    %c2_85 = arith.constant 2 : index
    %c0_86 = arith.constant 0 : index
    %170 = vector.load %arg6[%c2_85, %c0_86] : memref<3x128xf32, #tpu.memory_space<vmem>>, vector<1x128xf32>
    %cst_87 = arith.constant 9.99999974E-6 : f32
    %171 = vector.broadcast %cst_87 : f32 to vector<1x128xf32>
    %172 = arith.addf %169, %171 : vector<1x128xf32>
    %173 = math.rsqrt %172 : vector<1x128xf32>
    %174 = arith.mulf %170, %173 : vector<1x128xf32>
    %175 = vector.broadcast %174 : vector<1x128xf32> to vector<64x128xf32>
    %176 = arith.mulf %164, %175 : vector<64x128xf32>
    %c2_88 = arith.constant 2 : index
    %c0_89 = arith.constant 0 : index
    %177 = vector.load %arg8[%c2_88, %c0_89] : memref<3x128xf32, #tpu.memory_space<vmem>>, vector<1x128xf32>
    %178 = vector.broadcast %177 : vector<1x128xf32> to vector<64x128xf32>
    %179 = arith.addf %176, %178 : vector<64x128xf32>
    %180 = arith.negf %179 : vector<64x128xf32>
    %181 = math.exp %180 : vector<64x128xf32>
    %cst_90 = arith.constant 1.000000e+00 : f32
    %182 = vector.broadcast %cst_90 : f32 to vector<64x128xf32>
    %183 = arith.addf %182, %181 : vector<64x128xf32>
    %184 = arith.divf %182, %183 : vector<64x128xf32>
    %185 = arith.mulf %158, %184 : vector<64x128xf32>
    %186 = arith.addf %124, %185 : vector<64x128xf32>
    %cst_91 = arith.constant 0.353553385 : f32
    %187 = vector.broadcast %cst_91 : f32 to vector<64x128xf32>
    %188 = arith.mulf %186, %187 : vector<64x128xf32>
    %c0_92 = arith.constant 0 : index
    %c0_93 = arith.constant 0 : index
    %189 = vector.load %arg9[%c0_92, %c0_93] : memref<64x128xf32, #tpu.memory_space<vmem>>, vector<64x128xf32>
    tpu.vector_store %arg9[%c0_92, %c0_93], %188 {strides = array<i32>} : memref<64x128xf32, #tpu.memory_space<vmem>>, vector<64x128xf32>,
    return
  }
}

</mosaic_0001>

<bundles_post_ra>
// kernel: tpu_custom_call.1
= control target key start
LH: loop header
LB: loop body
LE: loop exit
PB: predicated region body
PF: predicated region fallthrough
CT: control target
= control target key end

     0   :  { %14 = vsyncpa [#allocation3], 0  ;;  %s2729_s0 = inlined_call_operand.hbm [shape: f32[64,128], index: 0, kind: input, shape index: {}, may-alias: {0,9}]   ;;  %s2730_s1 = inlined_call_operand.hbm [shape: bf16[3,128,128], index: 1, kind: input, shape index: {}]   ;;  %s2731_s2 = inlined_call_operand.hbm [shape: bf16[3,128,128], index: 2, kind: input, shape index: {}]   ;;  %s2732_s3 = inlined_call_operand.vmem [shape: f32[3,128], index: 3, kind: input, shape index: {}]   ;;  %s2733_s4 = inlined_call_operand.vmem [shape: f32[3,128], index: 4, kind: input, shape index: {}]   ;;  %s2734_s5 = inlined_call_operand.vmem [shape: f32[3,128], index: 5, kind: input, shape index: {}]   ;;  %s2735_s6 = inlined_call_operand.vmem [shape: f32[3,128], index: 6, kind: input, shape index: {}]   ;;  %s2736_s7 = inlined_call_operand.vmem [shape: f32[3,128], index: 7, kind: input, shape index: {}]   ;;  %s2737_s8 = inlined_call_operand.vmem [shape: f32[3,128], index: 8, kind: input, shape index: {}]   ;;  %s2738_s9 = inlined_call_operand.hbm [shape: f32[64,128], index: 9, kind: output, shape index: {}, may-alias: {0,9}]  }
   0x1   :  { %15 = vsyncpa [#allocation6], 0 }
   0x2   :  { %16 = vsyncpa [#allocation4], 0  ;;  %s2125_s30 = smov [#allocation5]   ;;  %s2031_s13 = scalar_lea.hbm %s2730_s1, 3072 }
   0x3   :  { %s34_s10 = sshll.u32 %s2125_s30, 4  ;;  %p2032_p0 = scmp.ne.s32.totalorder %s2730_s1, %s2031_s13  ;;  %s35_s10 = int_to_ptr.vmem [resolvable:$true] %s34_s10 }
   0x4   :  { %p2035_p1 = scmp.lt.u32.totalorder %s2031_s13, %s2730_s1 }
   0x6   :  { %p2037_p2 = pnand %p2035_p1, %p2032_p0 }
   0x8   :  { %2040 = shalt.err (!%p2037_p2)
}
   0x9   :  { %s2041_s18 = scalar_lea.vmem %s35_s10, 3072  ;;  %p2046_p4 = scmp.lt.s32.totalorder %s35_s10, %s35_s10 }
   0xa   :  { %p2042_p3 = scmp.ne.s32.totalorder %s35_s10, %s2041_s18  ;;  %p2047_p5 = scmp.lt.s32.totalorder %s2041_s18, %s2041_s18 }
   0xc   :  { %p2048_p6 = por %p2047_p5, %p2046_p4 }
   0xe   :  { %p2049_p7 = pnand %p2048_p6, %p2042_p3 }
  0x10   :  { %2052 = shalt.err (!%p2049_p7)
}
  0x11   :  { %s2126_s19 = smov 64   ;;  %s2127_s20 = smov 4  }
  0x12   :  { %40 = dma.hbm_to_vmem [thread:$0]  %s2730_s1, 3072, %s35_s10, [#allocation6], %s2126_s19, %s2126_s19, %s2127_s20  }
  0x13   :  { %s2128_s23 = smov [#allocation2]   ;;  %s2053_s27 = scalar_lea.hbm %s2729_s0, 1024 }
  0x14   :  { %s22_s24 = sshll.u32 %s2128_s23, 4  ;;  %p2054_p8 = scmp.ne.s32.totalorder %s2729_s0, %s2053_s27  ;;  %s23_s24 = int_to_ptr.vmem [resolvable:$true] %s22_s24 }
  0x15   :  { %p2057_p9 = scmp.lt.u32.totalorder %s2053_s27, %s2729_s0 }
  0x17   :  { %p2059_p10 = pnand %p2057_p9, %p2054_p8 }
  0x19   :  { %2062 = shalt.err (!%p2059_p10)
}
  0x1a   :  { %s2063_s12 = scalar_lea.vmem %s23_s24, 1024  ;;  %p2068_p12 = scmp.lt.s32.totalorder %s23_s24, %s23_s24 }
  0x1b   :  { %p2064_p11 = scmp.ne.s32.totalorder %s23_s24, %s2063_s12  ;;  %p2069_p13 = scmp.lt.s32.totalorder %s2063_s12, %s2063_s12 }
  0x1d   :  { %p2070_p0 = por %p2069_p13, %p2068_p12 }
  0x1f   :  { %p2071_p1 = pnand %p2070_p0, %p2064_p11 }
  0x21   :  { %2074 = shalt.err (!%p2071_p1)
}
  0x22   :  { %s2129_s1 = smov 128   ;;  %s2130_s10 = smov 8  }
  0x23   :  { %28 = dma.hbm_to_vmem [thread:$0]  %s2729_s0, 1024, %s23_s24, [#allocation3], %s2129_s1, %s2129_s1, %s2130_s10  }
  0x24   :  { %s2131_s15 = smov [#allocation7]   ;;  %s2075_s21 = scalar_lea.hbm %s2731_s2, 3072 }
  0x25   :  { %s46_s16 = sshll.u32 %s2131_s15, 4  ;;  %p2076_p2 = scmp.ne.s32.totalorder %s2731_s2, %s2075_s21  ;;  %s47_s16 = int_to_ptr.vmem [resolvable:$true] %s46_s16 }
  0x26   :  { %p2079_p3 = scmp.lt.u32.totalorder %s2075_s21, %s2731_s2 }
  0x28   :  { %p2081_p4 = pnand %p2079_p3, %p2076_p2 }
  0x2a   :  { %2084 = shalt.err (!%p2081_p4)
}
  0x2b   :  { %s2085_s27 = scalar_lea.vmem %s47_s16, 3072  ;;  %p2090_p6 = scmp.lt.s32.totalorder %s47_s16, %s47_s16 }
  0x2c   :  { %p2086_p5 = scmp.ne.s32.totalorder %s47_s16, %s2085_s27  ;;  %p2091_p7 = scmp.lt.s32.totalorder %s2085_s27, %s2085_s27 }
  0x2e   :  { %p2092_p8 = por %p2091_p7, %p2090_p6 }
  0x30   :  { %p2093_p9 = pnand %p2092_p8, %p2086_p5 }
  0x32   :  { %2096 = shalt.err (!%p2093_p9)
}
  0x33   :  { %52 = dma.hbm_to_vmem [thread:$0]  %s2731_s2, 3072, %s47_s16, [#allocation6], %s2126_s19, %s2126_s19, %s2127_s20  }
  0x34   :  { %2119 = dma.done.wait [#allocation3], 1024  }
  0x35   :  { %2120 = vsyncadd [#allocation3], 4294966272 }
  0x36   :  { %2121 = dma.done.wait [#allocation6], 6144  }
  0x37   :  { %2122 = vsyncadd [#allocation6], 4294961152  ;;  %v1875_v0 = vld [vmem:[#allocation5] sm:$0xff]   ;;  %v1877_v2 = vld [vmem:[#allocation5 + $0x8] sm:$0xff]  }
  0x38   :  { %v1876_v1 = vld [vmem:[#allocation7] sm:$0xff]   ;;  %1723 = vmatprep.subr.bf16.mxu0 %v1875_v0  ;;  %v1878_v3 = vld [vmem:[#allocation7 + $0x8] sm:$0xff]   ;;  %v1879_v4 = vld [vmem:[#allocation5 + $0x10] sm:$0xff]  }
  0x39   :  { %1747 = vmatprep.subr.bf16.mxu1 %v1876_v1  ;;  %1724 = vmatpush3.bf16.msra.mxu0 %v1875_v0  ;;  %v1880_v5 = vld [vmem:[#allocation7 + $0x10] sm:$0xff]   ;;  %v1881_v6 = vld [vmem:[#allocation5 + $0x18] sm:$0xff]   ;;  %v1883_v8 = vld [vmem:[#allocation5 + $0x20] sm:$0xff]  }
  0x3a   :  { %1748 = vmatpush3.bf16.msra.mxu1 %v1876_v1  ;;  %1725 = vmatprep.subr.bf16.mxu0 %v1877_v2  ;;  %v1882_v7 = vld [vmem:[#allocation7 + $0x18] sm:$0xff]   ;;  %v1884_v9 = vld [vmem:[#allocation7 + $0x20] sm:$0xff]   ;;  %v1885_v10 = vld [vmem:[#allocation5 + $0x28] sm:$0xff]  }
  0x3b   :  { %1749 = vmatprep.subr.bf16.mxu1 %v1878_v3  ;;  %v2228_v11 = vld [vmem:[#allocation2] sm:$0xff]  ;;  %v2230_v12 = vld [vmem:[#allocation2 + $0x8] sm:$0xff]  ;;  %v1887_v15 = vld [vmem:[#allocation5 + $0x30] sm:$0xff]  }
  0x3c   :  { %v1886_v13 = vld [vmem:[#allocation7 + $0x28] sm:$0xff]   ;;  %v83_v14 = vpack.c.bf16 %v2230_v12, %v2228_v11  ;;  %v1888_v16 = vld [vmem:[#allocation7 + $0x30] sm:$0xff]   ;;  %v1889_v17 = vld [vmem:[#allocation5 + $0x38] sm:$0xff]  }
  0x3d   :  { %1726 = vmatpush3.bf16.msra.mxu0 %v1877_v2  ;;  %v1890_v18 = vld [vmem:[#allocation7 + $0x38] sm:$0xff]   ;;  %v2234_v19 = vld [vmem:[#allocation2 + $0x10] sm:$0xff]  ;;  %v2238_v21 = vld [vmem:[#allocation2 + $0x20] sm:$0xff] }
  0x3e   :  { %1750 = vmatpush3.bf16.msra.mxu1 %v1878_v3  ;;  %1727 = vmatprep.subr.bf16.mxu0 %v1879_v4  ;;  %v2236_v20 = vld [vmem:[#allocation2 + $0x18] sm:$0xff]  ;;  %v2240_v22 = vld [vmem:[#allocation2 + $0x28] sm:$0xff]  ;;  %v2246_v25 = vld [vmem:[#allocation2 + $0x30] sm:$0xff] }
  0x3f   :  { %1751 = vmatprep.subr.bf16.mxu1 %v1880_v5  ;;  %1739 = vmatprep.mubr.bf16.mxu0 %v83_v14  ;;  %v84_v23 = vpack.c.bf16 %v2236_v20, %v2234_v19  ;;  %v85_v24 = vpack.c.bf16 %v2240_v22, %v2238_v21  ;;  %v2248_v26 = vld [vmem:[#allocation2 + $0x38] sm:$0xff]  ;;  %v1891_v28 = vld [vmem:[#allocation5 + $0x40] sm:$0xff]   ;;  %v1893_v30 = vld [vmem:[#allocation5 + $0x48] sm:$0xff]  }
  0x40   :  { %1763 = vmatprep.mubr.bf16.mxu1 %v83_v14  ;;  %v86_v27 = vpack.c.bf16 %v2248_v26, %v2246_v25  ;;  %v1892_v29 = vld [vmem:[#allocation7 + $0x40] sm:$0xff]   ;;  %v1894_v31 = vld [vmem:[#allocation7 + $0x48] sm:$0xff]   ;;  %v1895_v32 = vld [vmem:[#allocation5 + $0x50] sm:$0xff]  }
  0x41   :  { %1728 = vmatpush3.bf16.msra.mxu0 %v1879_v4  ;;  %v1896_v33 = vld [vmem:[#allocation7 + $0x50] sm:$0xff]   ;;  %v1897_v34 = vld [vmem:[#allocation5 + $0x58] sm:$0xff]   ;;  %v1899_v36 = vld [vmem:[#allocation5 + $0x60] sm:$0xff]  }
  0x42   :  { %1752 = vmatpush3.bf16.msra.mxu1 %v1880_v5  ;;  %1729 = vmatprep.subr.bf16.mxu0 %v1881_v6  ;;  %v1898_v35 = vld [vmem:[#allocation7 + $0x58] sm:$0xff]   ;;  %v1900_v37 = vld [vmem:[#allocation7 + $0x60] sm:$0xff]   ;;  %v1901_v38 = vld [vmem:[#allocation5 + $0x68] sm:$0xff]  }
  0x43   :  { %1753 = vmatprep.subr.bf16.mxu1 %v1882_v7  ;;  %v1902_v39 = vld [vmem:[#allocation7 + $0x68] sm:$0xff]   ;;  %v1903_v40 = vld [vmem:[#allocation5 + $0x70] sm:$0xff]   ;;  %v1905_v42 = vld [vmem:[#allocation5 + $0x78] sm:$0xff]  }
  0x44   :  { %v1904_v41 = vld [vmem:[#allocation7 + $0x70] sm:$0xff]   ;;  %v1906_v43 = vld [vmem:[#allocation7 + $0x78] sm:$0xff]   ;;  %v1567_v44 = vld [vmem:[%s2732_s3] ss:$0 sm:$0xff] }
  0x45   :  { %1730 = vmatpush3.bf16.msra.mxu0 %v1881_v6  ;;  %v1576_v48 = vld [vmem:[%s2733_s4] ss:$0 sm:$0xff] }
  0x46   :  { %1754 = vmatpush3.bf16.msra.mxu1 %v1882_v7  ;;  %1731 = vmatprep.subr.bf16.mxu0 %v1883_v8 }
  0x47   :  { %1755 = vmatprep.subr.bf16.mxu1 %v1884_v9 }
  0x49   :  { %1732 = vmatpush3.bf16.msra.mxu0 %v1883_v8 }
  0x4a   :  { %1756 = vmatpush3.bf16.msra.mxu1 %v1884_v9  ;;  %1733 = vmatprep.subr.bf16.mxu0 %v1885_v10 }
  0x4b   :  { %1757 = vmatprep.subr.bf16.mxu1 %v1886_v13 }
  0x4d   :  { %1734 = vmatpush3.bf16.msra.mxu0 %v1885_v10 }
  0x4e   :  { %1758 = vmatpush3.bf16.msra.mxu1 %v1886_v13  ;;  %1735 = vmatprep.subr.bf16.mxu0 %v1887_v15 }
  0x4f   :  { %1759 = vmatprep.subr.bf16.mxu1 %v1888_v16 }
  0x51   :  { %1736 = vmatpush3.bf16.msra.mxu0 %v1887_v15 }
  0x52   :  { %1760 = vmatpush3.bf16.msra.mxu1 %v1888_v16  ;;  %1737 = vmatprep.subr.bf16.mxu0 %v1889_v17 }
  0x53   :  { %1761 = vmatprep.subr.bf16.mxu1 %v1890_v18 }
  0x55   :  { %1738 = vmatpush3.bf16.msra.mxu0 %v1889_v17 }
  0x56   :  { %1762 = vmatpush3.bf16.msra.mxu1 %v1890_v18  ;;  %1771 = vmatprep.subr.bf16.mxu0 %v1891_v28 }
  0x57   :  { %1795 = vmatprep.subr.bf16.mxu1 %v1892_v29 }
  0x58   :  { %1740 = vmatmul.mubr.bf16.vlgmr.msra.gmra.mrb[0].mxu0 %v84_v23 }
  0x59   :  { %1764 = vmatmul.mubr.bf16.vlgmr.msra.gmra.mrb[0].mxu1 %v84_v23  ;;  %1743 = vmatprep.mubr.bf16.mxu0 %v85_v24 }
  0x5a   :  { %1767 = vmatprep.mubr.bf16.mxu1 %v85_v24  ;;  %1772 = vmatpush3.bf16.msra.mxu0 %v1891_v28 }
  0x5b   :  { %1796 = vmatpush3.bf16.msra.mxu1 %v1892_v29  ;;  %1773 = vmatprep.subr.bf16.mxu0 %v1893_v30 }
  0x5c   :  { %1797 = vmatprep.subr.bf16.mxu1 %v1894_v31 }
  0x5e   :  { %1774 = vmatpush3.bf16.msra.mxu0 %v1893_v30 }
  0x5f   :  { %1798 = vmatpush3.bf16.msra.mxu1 %v1894_v31  ;;  %1775 = vmatprep.subr.bf16.mxu0 %v1895_v32 }
  0x60   :  { %1744 = vmatmul.mubr.bf16.gmra.mrb[4].mxu0 %v86_v27  ;;  %1799 = vmatprep.subr.bf16.mxu1 %v1896_v33 }
  0x61   :  { %1768 = vmatmul.mubr.bf16.gmra.mrb[4].mxu1 %v86_v27 }
  0x62   :  { %1776 = vmatpush3.bf16.msra.mxu0 %v1895_v32 }
  0x63   :  { %1800 = vmatpush3.bf16.msra.mxu1 %v1896_v33  ;;  %1777 = vmatprep.subr.bf16.mxu0 %v1897_v34 }
  0x64   :  { %1801 = vmatprep.subr.bf16.mxu1 %v1898_v35 }
  0x66   :  { %1778 = vmatpush3.bf16.msra.mxu0 %v1897_v34 }
  0x67   :  { %1802 = vmatpush3.bf16.msra.mxu1 %v1898_v35  ;;  %1779 = vmatprep.subr.bf16.mxu0 %v1899_v36 }
  0x68   :  { %1803 = vmatprep.subr.bf16.mxu1 %v1900_v37 }
  0x6a   :  { %1780 = vmatpush3.bf16.msra.mxu0 %v1899_v36 }
  0x6b   :  { %1804 = vmatpush3.bf16.msra.mxu1 %v1900_v37  ;;  %1781 = vmatprep.subr.bf16.mxu0 %v1901_v38 }
  0x6c   :  { %1805 = vmatprep.subr.bf16.mxu1 %v1902_v39 }
  0x6e   :  { %1782 = vmatpush3.bf16.msra.mxu0 %v1901_v38 }
  0x6f   :  { %1806 = vmatpush3.bf16.msra.mxu1 %v1902_v39  ;;  %1783 = vmatprep.subr.bf16.mxu0 %v1903_v40 }
  0x70   :  { %1807 = vmatprep.subr.bf16.mxu1 %v1904_v41 }
  0x72   :  { %1784 = vmatpush3.bf16.msra.mxu0 %v1903_v40 }
  0x73   :  { %1808 = vmatpush3.bf16.msra.mxu1 %v1904_v41  ;;  %1785 = vmatprep.subr.bf16.mxu0 %v1905_v42 }
  0x74   :  { %1809 = vmatprep.subr.bf16.mxu1 %v1906_v43 }
  0x76   :  { %1786 = vmatpush3.bf16.msra.mxu0 %v1905_v42 }
  0x77   :  { %1810 = vmatpush3.bf16.msra.mxu1 %v1906_v43 }
 0x12b   :  { %v1741_v45 = vpop.f32.mrb[0].mxu0 }
 0x12c   :  { %v1765_v46 = vpop.f32.mrb[0].mxu1  ;;  %v206_v47 = vpop.f32.mrb[1].mxu0  ;;  %v215_v54 = vadd.f32 %v1741_v45, %v1567_v44 }
 0x12d   :  { %v207_v49 = vadd.f32 %v1567_v44, %v206_v47  ;;  %v324_v50 = vpop.f32.mrb[1].mxu1  ;;  %v1742_v51 = vpop.f32.mrb[2].mxu0  ;;  %v333_v61 = vadd.f32 %v1765_v46, %v1576_v48 }
 0x12e   :  { %v1766_v52 = vpop.f32.mrb[2].mxu1  ;;  %v209_v53 = vpop.f32.mrb[3].mxu0  ;;  %v325_v57 = vadd.f32 %v1576_v48, %v324_v50  ;;  %v218_v59 = vadd.f32 %v1742_v51, %v1567_v44 }
 0x12f   :  { %v210_v55 = vadd.f32 %v1567_v44, %v209_v53  ;;  %v327_v56 = vpop.f32.mrb[3].mxu1  ;;  %v336_v1 = vadd.f32 %v1766_v52, %v1576_v48 }
 0x130   :  { %v328_v58 = vadd.f32 %v1576_v48, %v327_v56 }
 0x131   :  { %v355_v60 = vadd.f32 %v210_v55, %v207_v49 }
 0x132   :  { %v428_v62 = vadd.f32 %v328_v58, %v325_v57 }
 0x133   :  { %v356_v63 = vadd.f32 %v355_v60, %v215_v54  ;;  %v1745_v0 = vpop.f32.mrb[4].mxu0 }
 0x134   :  { %v429_v2 = vadd.f32 %v428_v62, %v333_v61  ;;  %v1769_v3 = vpop.f32.mrb[4].mxu1  ;;  %v222_v4 = vpop.f32.mrb[5].mxu0  ;;  %v231_v15 = vadd.f32 %v1745_v0, %v1567_v44 }
 0x135   :  { %v223_v5 = vadd.f32 %v1567_v44, %v222_v4  ;;  %v357_v6 = vadd.f32 %v356_v63, %v218_v59  ;;  %v340_v7 = vpop.f32.mrb[5].mxu1  ;;  %v1746_v8 = vpop.f32.mrb[6].mxu0  ;;  %v349_v29 = vadd.f32 %v1769_v3, %v1576_v48 }
 0x136   :  { %v341_v9 = vadd.f32 %v1576_v48, %v340_v7  ;;  %v430_v10 = vadd.f32 %v429_v2, %v336_v1  ;;  %v1770_v13 = vpop.f32.mrb[6].mxu1  ;;  %v225_v14 = vpop.f32.mrb[7].mxu0  ;;  %v234_v27 = vadd.f32 %v1746_v8, %v1567_v44 }
 0x137   :  { %v358_v16 = vadd.f32 %v357_v6, %v223_v5  ;;  %v226_v17 = vadd.f32 %v1567_v44, %v225_v14  ;;  %v343_v18 = vpop.f32.mrb[7].mxu1  ;;  %v352_v32 = vadd.f32 %v1770_v13, %v1576_v48 }
 0x138   :  { %v431_v23 = vadd.f32 %v430_v10, %v341_v9  ;;  %v344_v24 = vadd.f32 %v1576_v48, %v343_v18 }
 0x139   :  { %v359_v28 = vadd.f32 %v358_v16, %v226_v17 }
 0x13a   :  { %v432_v30 = vadd.f32 %v431_v23, %v344_v24 }
 0x13b   :  { %v360_v31 = vadd.f32 %v359_v28, %v231_v15 }
 0x13c   :  { %v433_v33 = vadd.f32 %v432_v30, %v349_v29 }
 0x13d   :  { %v361_v34 = vadd.f32 %v360_v31, %v234_v27 }
 0x13e   :  { %v434_v35 = vadd.f32 %v433_v33, %v352_v32 }
 0x13f   :  { %v362_v36 = vrot.slane %v361_v34, 4 }
 0x140   :  { %v435_v37 = vrot.slane %v434_v35, 4 }
 0x141   :  { %v363_v38 = vadd.f32 %v362_v36, %v361_v34 }
 0x142   :  { %v436_v39 = vadd.f32 %v435_v37, %v434_v35 }
 0x143   :  { %v364_v40 = vrot.slane %v363_v38, 2 }
 0x144   :  { %v437_v41 = vrot.slane %v436_v39, 2 }
 0x145   :  { %v365_v42 = vadd.f32 %v364_v40, %v363_v38 }
 0x146   :  { %v438_v43 = vadd.f32 %v437_v41, %v436_v39 }
 0x147   :  { %v366_v45 = vrot.slane %v365_v42, 1 }
 0x148   :  { %v439_v46 = vrot.slane %v438_v43, 1 }
 0x149   :  { %v367_v47 = vadd.f32 %v366_v45, %v365_v42 }
 0x14a   :  { %v440_v44 = vadd.f32 %v439_v46, %v438_v43 }
 0x14b   :  { %v368_v50 = vmul.f32 0.015625, %v367_v47 }
 0x14c   :  { %v441_v51 = vmul.f32 0.015625, %v440_v44 }
 0x14d   :  { %v2258_v52 = vsub.f32 %v207_v49, %v368_v50  ;;  %v2260_v48 = vsub.f32 %v210_v55, %v368_v50  ;;  %v2262_v53 = vsub.f32 %v215_v54, %v368_v50  ;;  %v2264_v56 = vsub.f32 %v218_v59, %v368_v50 }
 0x14e   :  { %v2266_v60 = vsub.f32 %v223_v5, %v368_v50  ;;  %v2268_v62 = vsub.f32 %v226_v17, %v368_v50  ;;  %v2270_v63 = vsub.f32 %v231_v15, %v368_v50  ;;  %v2272_v0 = vsub.f32 %v234_v27, %v368_v50 }
 0x14f   :  { %v377_v2 = vmul.f32 %v2258_v52, %v2258_v52  ;;  %v378_v49 = vmul.f32 %v2260_v48, %v2260_v48  ;;  %v379_v54 = vmul.f32 %v2262_v53, %v2262_v53  ;;  %v380_v55 = vmul.f32 %v2264_v56, %v2264_v56 }
 0x150   :  { %v2282_v3 = vsub.f32 %v325_v57, %v441_v51  ;;  %v2284_v4 = vsub.f32 %v328_v58, %v441_v51  ;;  %v2286_v5 = vsub.f32 %v333_v61, %v441_v51  ;;  %v2288_v6 = vsub.f32 %v336_v1, %v441_v51 }
 0x151   :  { %v385_v59 = vadd.f32 %v378_v49, %v377_v2  ;;  %v2290_v7 = vsub.f32 %v341_v9, %v441_v51  ;;  %v2292_v8 = vsub.f32 %v344_v24, %v441_v51  ;;  %v2294_v10 = vsub.f32 %v349_v29, %v441_v51 }
 0x152   :  { %v2296_v14 = vsub.f32 %v352_v32, %v441_v51  ;;  %v450_v15 = vmul.f32 %v2282_v3, %v2282_v3  ;;  %v451_v57 = vmul.f32 %v2284_v4, %v2284_v4  ;;  %v381_v58 = vmul.f32 %v2266_v60, %v2266_v60 }
 0x153   :  { %v386_v13 = vadd.f32 %v385_v59, %v379_v54  ;;  %v452_v1 = vmul.f32 %v2286_v5, %v2286_v5  ;;  %v382_v16 = vmul.f32 %v2268_v62, %v2268_v62  ;;  %v453_v18 = vmul.f32 %v2288_v6, %v2288_v6 }
 0x154   :  { %v458_v9 = vadd.f32 %v451_v57, %v450_v15  ;;  %v383_v24 = vmul.f32 %v2270_v63, %v2270_v63  ;;  %v454_v28 = vmul.f32 %v2290_v7, %v2290_v7  ;;  %v384_v30 = vmul.f32 %v2272_v0, %v2272_v0 }
 0x155   :  { %v387_v61 = vadd.f32 %v386_v13, %v380_v55  ;;  %v455_v32 = vmul.f32 %v2292_v8, %v2292_v8  ;;  %v456_v35 = vmul.f32 %v2294_v10, %v2294_v10  ;;  %v457_v38 = vmul.f32 %v2296_v14, %v2296_v14 }
 0x156   :  { %v459_v23 = vadd.f32 %v458_v9, %v452_v1  ;;  %v403_v13 = vlaneseq }
 0x157   :  { %v388_v17 = vadd.f32 %v387_v61, %v381_v58  ;;  %v399_v58 = vld [vmem:[%s2734_s5] sm:$0x1] }
 0x158   :  { %v460_v29 = vadd.f32 %v459_v23, %v453_v18  ;;  %v404_v57 = vshrl.u32 %v403_v13, 7 }
 0x159   :  { %v389_v27 = vadd.f32 %v388_v17, %v382_v16  ;;  %v472_v16 = vld [vmem:[%s2735_s6] sm:$0x1] }
 0x15a   :  { %v461_v33 = vadd.f32 %v460_v29, %v454_v28  ;;  %v2325_v61 = vsub.s32 0, %v404_v57 }
 0x15b   :  { %v390_v31 = vadd.f32 %v389_v27, %v383_v24 }
 0x15c   :  { %v462_v36 = vadd.f32 %v461_v33, %v455_v32 }
 0x15d   :  { %v391_v34 = vadd.f32 %v390_v31, %v384_v30 }
 0x15e   :  { %v463_v39 = vadd.f32 %v462_v36, %v456_v35 }
 0x15f   :  { %v392_v37 = vrot.slane %v391_v34, 4 }
 0x160   :  { %v464_v41 = vadd.f32 %v463_v39, %v457_v38 }
 0x161   :  { %v393_v40 = vadd.f32 %v392_v37, %v391_v34 }
 0x162   :  { %v465_v43 = vrot.slane %v464_v41, 4 }
 0x163   :  { %v394_v42 = vrot.slane %v393_v40, 2 }
 0x164   :  { %v466_v46 = vadd.f32 %v465_v43, %v464_v41 }
 0x165   :  { %v395_v45 = vadd.f32 %v394_v42, %v393_v40 }
 0x166   :  { %v467_v44 = vrot.slane %v466_v46, 2 }
 0x167   :  { %v396_v47 = vrot.slane %v395_v45, 1 }
 0x168   :  { %v468_v51 = vadd.f32 %v467_v44, %v466_v46 }
 0x169   :  { %v397_v50 = vadd.f32 %v396_v47, %v395_v45 }
 0x16a   :  { %v469_v49 = vrot.slane %v468_v51, 1 }
 0x16b   :  { %v398_v2 = vmul.f32 0.015625, %v397_v50 }
 0x16c   :  { %v470_v55 = vadd.f32 %v469_v49, %v468_v51 }
 0x16d   :  { %v400_v54 = vadd.f32 1e-05, %v398_v2 }
 0x16e   :  { %v471_v59 = vmul.f32 0.015625, %v470_v55 }
 0x16f   :  { %1923 = vrsqrt.f32 %v400_v54 }
 0x170   :  { %v473_v15 = vadd.f32 1e-05, %v471_v59 }
 0x172   :  { %1925 = vrsqrt.f32 %v473_v15 }
 0x179   :  { %v1924_v1 = vpop.eup %1923 }
 0x17a   :  { %v402_v9 = vmul.f32 %v1924_v1, %v399_v58 }
 0x17c   :  { %v406_v17 = vrot.slane %v402_v9, %v2325_v61  ;;  %v1926_v18 = vpop.eup %1925  ;;  %v1585_v9 = vld [vmem:[%s2736_s7] ss:$0 sm:$0xff] }
 0x17d   :  { %v475_v28 = vmul.f32 %v1926_v18, %v472_v16 }
 0x17e   :  { %v2332_v23 = vmul.f32 %v406_v17, %v2262_v53  ;;  %v2335_v24 = vmul.f32 %v406_v17, %v2264_v56  ;;  %v2338_v27 = vmul.f32 %v406_v17, %v2268_v62  ;;  %v2341_v29 = vmul.f32 %v406_v17, %v2258_v52  ;;  %v1586_v56 = vld [vmem:[%s2737_s8] ss:$0 sm:$0xff] }
 0x17f   :  { %v2344_v30 = vmul.f32 %v406_v17, %v2260_v48  ;;  %v2347_v31 = vmul.f32 %v406_v17, %v2266_v60  ;;  %v2350_v32 = vmul.f32 %v406_v17, %v2270_v63  ;;  %v479_v53 = vrot.slane %v475_v28, %v2325_v61 }
 0x180   :  { %v2357_v62 = vmul.f32 %v406_v17, %v2272_v0  ;;  %v422_v16 = vadd.f32 %v1585_v9, %v2332_v23  ;;  %v423_v18 = vadd.f32 %v1585_v9, %v2335_v24 }
 0x181   :  { %v480_v52 = vmul.f32 %v479_v53, %v2282_v3  ;;  %v481_v48 = vmul.f32 %v479_v53, %v2284_v4  ;;  %v482_v33 = vmul.f32 %v479_v53, %v2286_v5  ;;  %v483_v60 = vmul.f32 %v479_v53, %v2288_v6 }
 0x182   :  { %v484_v63 = vmul.f32 %v479_v53, %v2290_v7  ;;  %v485_v34 = vmul.f32 %v479_v53, %v2292_v8  ;;  %v486_v35 = vmul.f32 %v479_v53, %v2294_v10  ;;  %v487_v36 = vmul.f32 %v479_v53, %v2296_v14 }
 0x183   :  { %v495_v37 = vadd.f32 %v1586_v56, %v482_v33  ;;  %v496_v38 = vadd.f32 %v1586_v56, %v483_v60  ;;  %v493_v41 = vadd.f32 %v1586_v56, %v480_v52  ;;  %v494_v5 = vadd.f32 %v1586_v56, %v481_v48 }
 0x184   :  { %v497_v0 = vadd.f32 %v1586_v56, %v484_v63  ;;  %v498_v39 = vadd.f32 %v1586_v56, %v485_v34  ;;  %v499_v40 = vadd.f32 %v1586_v56, %v486_v35  ;;  %v500_v3 = vadd.f32 %v1586_v56, %v487_v36 }
 0x185   :  { %v1589_v4 = vmul.f32 -1.442695, %v495_v37  ;;  %v1590_v42 = vmul.f32 -1.442695, %v496_v38  ;;  %v1587_v10 = vmul.f32 -1.442695, %v493_v41  ;;  %v424_v56 = vadd.f32 %v1585_v9, %v2347_v31 }
 0x186   :  { %v1591_v43 = vmul.f32 -1.442695, %v497_v0  ;;  %v1592_v6 = vmul.f32 -1.442695, %v498_v39  ;;  %v1593_v7 = vmul.f32 -1.442695, %v499_v40  ;;  %v425_v48 = vadd.f32 %v1585_v9, %v2338_v27 }
 0x187   :  { %1927 = vpow2.f32 %v1589_v4  ;;  %v1594_v8 = vmul.f32 -1.442695, %v500_v3  ;;  %v1588_v14 = vmul.f32 -1.442695, %v494_v5  ;;  %v426_v34 = vadd.f32 %v1585_v9, %v2350_v32  ;;  %v1908_v5 = vld [vmem:[#allocation7 + $0x80] sm:$0xff]  }
 0x188   :  { %1929 = vpow2.f32 %v1590_v42  ;;  %v427_v37 = vadd.f32 %v1585_v9, %v2357_v62  ;;  %v420_v38 = vadd.f32 %v1585_v9, %v2341_v29  ;;  %v421_v39 = vadd.f32 %v1585_v9, %v2344_v30  ;;  %v1907_v42 = vld [vmem:[#allocation5 + $0x80] sm:$0xff]   ;;  %1843 = vmatprep.subr.bf16.mxu1 %v1908_v5 }
 0x189   :  { %1931 = vpow2.f32 %v1591_v43  ;;  %1819 = vmatprep.subr.bf16.mxu0 %v1907_v42  ;;  %v1909_v43 = vld [vmem:[#allocation5 + $0x88] sm:$0xff]  }
 0x18a   :  { %1933 = vpow2.f32 %v1592_v6  ;;  %v1910_v6 = vld [vmem:[#allocation7 + $0x88] sm:$0xff]  }
 0x18b   :  { %1935 = vpow2.f32 %v1593_v7  ;;  %v1913_v7 = vld [vmem:[#allocation5 + $0x98] sm:$0xff]  }
 0x18c   :  { %1937 = vpow2.f32 %v1594_v8  ;;  %v1914_v8 = vld [vmem:[#allocation7 + $0x98] sm:$0xff]  }
 0x18d   :  { %1939 = vpow2.f32 %v1587_v10  ;;  %v1915_v10 = vld [vmem:[#allocation5 + $0xa0] sm:$0xff]  }
 0x18e   :  { %1941 = vpow2.f32 %v1588_v14  ;;  %v1916_v14 = vld [vmem:[#allocation7 + $0xa0] sm:$0xff]  }
 0x191   :  { %v1928_v45 = vpop.eup %1927 }
 0x192   :  { %v1930_v46 = vpop.eup %1929  ;;  %v527_v47 = vadd.f32 1.0, %v1928_v45  ;;  %v1917_v45 = vld [vmem:[#allocation5 + $0xa8] sm:$0xff]  }
 0x193   :  { %v1932_v44 = vpop.eup %1931  ;;  %v528_v50 = vadd.f32 1.0, %v1930_v46  ;;  %v1918_v46 = vld [vmem:[#allocation7 + $0xa8] sm:$0xff]  }
 0x194   :  { %v1934_v51 = vpop.eup %1933  ;;  %1943 = vrcp.f32 %v527_v47  ;;  %v529_v2 = vadd.f32 1.0, %v1932_v44  ;;  %v1919_v47 = vld [vmem:[#allocation5 + $0xb0] sm:$0xff]  }
 0x195   :  { %v1936_v49 = vpop.eup %1935  ;;  %v530_v54 = vadd.f32 1.0, %v1934_v51  ;;  %1945 = vrcp.f32 %v528_v50  ;;  %v1920_v44 = vld [vmem:[#allocation7 + $0xb0] sm:$0xff]   ;;  %v1921_v50 = vld [vmem:[#allocation5 + $0xb8] sm:$0xff]  }
 0x196   :  { %v1938_v55 = vpop.eup %1937  ;;  %1947 = vrcp.f32 %v529_v2  ;;  %v531_v59 = vadd.f32 1.0, %v1936_v49  ;;  %v1922_v51 = vld [vmem:[#allocation7 + $0xb8] sm:$0xff]  }
 0x197   :  { %v1940_v13 = vpop.eup %1939  ;;  %1949 = vrcp.f32 %v530_v54  ;;  %v532_v15 = vadd.f32 1.0, %v1938_v55  ;;  %v1595_v54 = vld [vmem:[%s2732_s3 + $0x1] ss:$0 sm:$0xff] }
 0x198   :  { %v1942_v57 = vpop.eup %1941  ;;  %v525_v58 = vadd.f32 1.0, %v1940_v13  ;;  %1951 = vrcp.f32 %v531_v59  ;;  %v1604_v55 = vld [vmem:[%s2733_s4 + $0x1] ss:$0 sm:$0xff] }
 0x199   :  { %v526_v1 = vadd.f32 1.0, %v1942_v57  ;;  %1953 = vrcp.f32 %v532_v15 }
 0x19a   :  { %1955 = vrcp.f32 %v525_v58 }
 0x19b   :  { %1957 = vrcp.f32 %v526_v1 }
 0x19e   :  { %v1944_v17 = vpop.eup %1943 }
 0x19f   :  { %v1946_v28 = vpop.eup %1945  ;;  %v551_v53 = vmul.f32 %v1944_v17, %v422_v16 }
 0x1a0   :  { %v1948_v52 = vpop.eup %1947  ;;  %v552_v33 = vmul.f32 %v1946_v28, %v423_v18 }
 0x1a1   :  { %v1950_v60 = vpop.eup %1949  ;;  %v553_v63 = vmul.f32 %v1948_v52, %v424_v56  ;;  %v2379_v27 = vadd.f32 %v551_v53, %v2234_v19 }
 0x1a2   :  { %v1952_v35 = vpop.eup %1951  ;;  %v554_v36 = vmul.f32 %v1950_v60, %v425_v48  ;;  %v2382_v41 = vadd.f32 %v552_v33, %v2236_v20 }
 0x1a3   :  { %v1954_v23 = vpop.eup %1953  ;;  %v555_v24 = vmul.f32 %v1952_v35, %v426_v34  ;;  %v2391_v29 = vadd.f32 %v553_v63, %v2238_v21 }
 0x1a4   :  { %v1956_v0 = vpop.eup %1955  ;;  %v556_v31 = vmul.f32 %v1954_v23, %v427_v37  ;;  %v2394_v30 = vadd.f32 %v554_v36, %v2240_v22  ;;  %v566_v19 = vpack.c.bf16 %v2382_v41, %v2379_v27 }
 0x1a5   :  { %v1958_v40 = vpop.eup %1957  ;;  %v549_v3 = vmul.f32 %v1956_v0, %v420_v38 }
 0x1a6   :  { %v550_v32 = vmul.f32 %v1958_v40, %v421_v39  ;;  %v2406_v21 = vadd.f32 %v556_v31, %v2248_v26  ;;  %v1912_v26 = vld [vmem:[#allocation7 + $0x90] sm:$0xff]  }
 0x1a7   :  { %v2385_v4 = vadd.f32 %v549_v3, %v2228_v11  ;;  %v567_v11 = vpack.c.bf16 %v2394_v30, %v2391_v29 }
 0x1a8   :  { %v2388_v62 = vadd.f32 %v550_v32, %v2230_v12  ;;  %v2403_v12 = vadd.f32 %v555_v24, %v2246_v25  ;;  %v1911_v25 = vld [vmem:[#allocation5 + $0x90] sm:$0xff]  }
 0x1aa   :  { %v565_v20 = vpack.c.bf16 %v2388_v62, %v2385_v4  ;;  %v568_v22 = vpack.c.bf16 %v2406_v21, %v2403_v12 }
 0x1ac   :  { %1787 = vmatprep.mubr.bf16.mxu0 %v565_v20  ;;  %1811 = vmatprep.mubr.bf16.mxu1 %v565_v20 }
 0x1ad   :  { %1788 = vmatmul.mubr.bf16.vlgmr.msra.gmra.mrb[8].mxu0 %v566_v19  ;;  %1812 = vmatmul.mubr.bf16.vlgmr.msra.gmra.mrb[8].mxu1 %v566_v19 }
 0x1ae   :  { %1791 = vmatprep.mubr.bf16.mxu0 %v567_v11  ;;  %1815 = vmatprep.mubr.bf16.mxu1 %v567_v11 }
 0x1af   :  { %1820 = vmatpush3.bf16.msra.mxu0 %v1907_v42  ;;  %1844 = vmatpush3.bf16.msra.mxu1 %v1908_v5 }
 0x1b0   :  { %1821 = vmatprep.subr.bf16.mxu0 %v1909_v43  ;;  %1845 = vmatprep.subr.bf16.mxu1 %v1910_v6 }
 0x1b3   :  { %1822 = vmatpush3.bf16.msra.mxu0 %v1909_v43  ;;  %1846 = vmatpush3.bf16.msra.mxu1 %v1910_v6 }
 0x1b4   :  { %1823 = vmatprep.subr.bf16.mxu0 %v1911_v25  ;;  %1847 = vmatprep.subr.bf16.mxu1 %v1912_v26 }
 0x1b5   :  { %1792 = vmatmul.mubr.bf16.gmra.mrb[12].mxu0 %v568_v22  ;;  %1816 = vmatmul.mubr.bf16.gmra.mrb[12].mxu1 %v568_v22 }
 0x1b7   :  { %1824 = vmatpush3.bf16.msra.mxu0 %v1911_v25  ;;  %1848 = vmatpush3.bf16.msra.mxu1 %v1912_v26 }
 0x1b8   :  { %1825 = vmatprep.subr.bf16.mxu0 %v1913_v7  ;;  %1849 = vmatprep.subr.bf16.mxu1 %v1914_v8 }
 0x1bb   :  { %1826 = vmatpush3.bf16.msra.mxu0 %v1913_v7  ;;  %1850 = vmatpush3.bf16.msra.mxu1 %v1914_v8 }
 0x1bc   :  { %1827 = vmatprep.subr.bf16.mxu0 %v1915_v10  ;;  %1851 = vmatprep.subr.bf16.mxu1 %v1916_v14 }
 0x1bf   :  { %1828 = vmatpush3.bf16.msra.mxu0 %v1915_v10  ;;  %1852 = vmatpush3.bf16.msra.mxu1 %v1916_v14 }
 0x1c0   :  { %1829 = vmatprep.subr.bf16.mxu0 %v1917_v45  ;;  %1853 = vmatprep.subr.bf16.mxu1 %v1918_v46 }
 0x1c3   :  { %1830 = vmatpush3.bf16.msra.mxu0 %v1917_v45  ;;  %1854 = vmatpush3.bf16.msra.mxu1 %v1918_v46 }
 0x1c4   :  { %1831 = vmatprep.subr.bf16.mxu0 %v1919_v47  ;;  %1855 = vmatprep.subr.bf16.mxu1 %v1920_v44 }
 0x1c7   :  { %1832 = vmatpush3.bf16.msra.mxu0 %v1919_v47  ;;  %1856 = vmatpush3.bf16.msra.mxu1 %v1920_v44 }
 0x1c8   :  { %1833 = vmatprep.subr.bf16.mxu0 %v1921_v50  ;;  %1857 = vmatprep.subr.bf16.mxu1 %v1922_v51 }
 0x1cb   :  { %1834 = vmatpush3.bf16.msra.mxu0 %v1921_v50  ;;  %1858 = vmatpush3.bf16.msra.mxu1 %v1922_v51 }
 0x280   :  { %v1789_v2 = vpop.f32.mrb[8].mxu0  ;;  %v1813_v49 = vpop.f32.mrb[8].mxu1 }
 0x281   :  { %v690_v59 = vpop.f32.mrb[9].mxu0  ;;  %v808_v13 = vpop.f32.mrb[9].mxu1  ;;  %v699_v28 = vadd.f32 %v1789_v2, %v1595_v54  ;;  %v817_v53 = vadd.f32 %v1813_v49, %v1604_v55 }
 0x282   :  { %v1790_v15 = vpop.f32.mrb[10].mxu0  ;;  %v1814_v57 = vpop.f32.mrb[10].mxu1  ;;  %v691_v9 = vadd.f32 %v1595_v54, %v690_v59  ;;  %v2416_v16 = vadd.f32 %v1604_v55, %v808_v13 }
 0x283   :  { %v693_v58 = vpop.f32.mrb[11].mxu0  ;;  %v811_v1 = vpop.f32.mrb[11].mxu1  ;;  %v702_v48 = vadd.f32 %v1790_v15, %v1595_v54  ;;  %v820_v33 = vadd.f32 %v1814_v57, %v1604_v55 }
 0x284   :  { %v694_v17 = vadd.f32 %v1595_v54, %v693_v58  ;;  %v2418_v18 = vadd.f32 %v1604_v55, %v811_v1 }
 0x286   :  { %v839_v56 = vadd.f32 %v694_v17, %v691_v9  ;;  %v912_v52 = vadd.f32 %v2418_v18, %v2416_v16 }
 0x288   :  { %v840_v60 = vadd.f32 %v839_v56, %v699_v28  ;;  %v913_v63 = vadd.f32 %v912_v52, %v817_v53  ;;  %v1793_v34 = vpop.f32.mrb[12].mxu0  ;;  %v1817_v35 = vpop.f32.mrb[12].mxu1 }
 0x289   :  { %v706_v36 = vpop.f32.mrb[13].mxu0  ;;  %v824_v37 = vpop.f32.mrb[13].mxu1  ;;  %v715_v22 = vadd.f32 %v1793_v34, %v1595_v54  ;;  %v833_v42 = vadd.f32 %v1817_v35, %v1604_v55 }
 0x28a   :  { %v707_v23 = vadd.f32 %v1595_v54, %v706_v36  ;;  %v841_v38 = vadd.f32 %v840_v60, %v702_v48  ;;  %v825_v24 = vadd.f32 %v1604_v55, %v824_v37  ;;  %v914_v0 = vadd.f32 %v913_v63, %v820_v33  ;;  %v1794_v39 = vpop.f32.mrb[14].mxu0  ;;  %v1818_v31 = vpop.f32.mrb[14].mxu1 }
 0x28b   :  { %v709_v40 = vpop.f32.mrb[15].mxu0  ;;  %v827_v3 = vpop.f32.mrb[15].mxu1  ;;  %v718_v6 = vadd.f32 %v1794_v39, %v1595_v54  ;;  %v836_v25 = vadd.f32 %v1818_v31, %v1604_v55 }
 0x28c   :  { %v842_v32 = vadd.f32 %v841_v38, %v707_v23  ;;  %v915_v19 = vadd.f32 %v914_v0, %v825_v24  ;;  %v710_v20 = vadd.f32 %v1595_v54, %v709_v40  ;;  %v828_v11 = vadd.f32 %v1604_v55, %v827_v3 }
 0x28e   :  { %v843_v5 = vadd.f32 %v842_v32, %v710_v20  ;;  %v916_v43 = vadd.f32 %v915_v19, %v828_v11 }
 0x290   :  { %v844_v26 = vadd.f32 %v843_v5, %v715_v22  ;;  %v917_v7 = vadd.f32 %v916_v43, %v833_v42 }
 0x292   :  { %v845_v8 = vadd.f32 %v844_v26, %v718_v6  ;;  %v918_v10 = vadd.f32 %v917_v7, %v836_v25 }
 0x294   :  { %v846_v14 = vrot.slane %v845_v8, 4  ;;  %v919_v45 = vrot.slane %v918_v10, 4 }
 0x296   :  { %v847_v46 = vadd.f32 %v846_v14, %v845_v8  ;;  %v920_v47 = vadd.f32 %v919_v45, %v918_v10 }
 0x298   :  { %v848_v44 = vrot.slane %v847_v46, 2  ;;  %v921_v50 = vrot.slane %v920_v47, 2 }
 0x29a   :  { %v849_v51 = vadd.f32 %v848_v44, %v847_v46  ;;  %v922_v2 = vadd.f32 %v921_v50, %v920_v47 }
 0x29c   :  { %v850_v49 = vrot.slane %v849_v51, 1  ;;  %v923_v59 = vrot.slane %v922_v2, 1 }
 0x29e   :  { %v851_v13 = vadd.f32 %v850_v49, %v849_v51  ;;  %v924_v15 = vadd.f32 %v923_v59, %v922_v2 }
 0x2a0   :  { %v852_v57 = vmul.f32 0.015625, %v851_v13  ;;  %v925_v58 = vmul.f32 0.015625, %v924_v15 }
 0x2a2   :  { %v2422_v54 = vsub.f32 %v691_v9, %v852_v57  ;;  %v2424_v55 = vsub.f32 %v694_v17, %v852_v57  ;;  %v2426_v1 = vsub.f32 %v699_v28, %v852_v57  ;;  %v2428_v56 = vsub.f32 %v702_v48, %v852_v57 }
 0x2a3   :  { %v2430_v52 = vsub.f32 %v707_v23, %v852_v57  ;;  %v2432_v60 = vsub.f32 %v710_v20, %v852_v57  ;;  %v2434_v63 = vsub.f32 %v715_v22, %v852_v57  ;;  %v2436_v34 = vsub.f32 %v718_v6, %v852_v57 }
 0x2a4   :  { %v861_v35 = vmul.f32 %v2422_v54, %v2422_v54  ;;  %v862_v9 = vmul.f32 %v2424_v55, %v2424_v55  ;;  %v863_v17 = vmul.f32 %v2426_v1, %v2426_v1  ;;  %v864_v28 = vmul.f32 %v2428_v56, %v2428_v56 }
 0x2a5   :  { %v2447_v36 = vsub.f32 %v2416_v16, %v925_v58  ;;  %v2450_v37 = vsub.f32 %v2418_v18, %v925_v58  ;;  %v2452_v23 = vsub.f32 %v817_v53, %v925_v58  ;;  %v2454_v38 = vsub.f32 %v820_v33, %v925_v58 }
 0x2a6   :  { %v869_v48 = vadd.f32 %v862_v9, %v861_v35  ;;  %v2456_v0 = vsub.f32 %v825_v24, %v925_v58  ;;  %v2458_v39 = vsub.f32 %v828_v11, %v925_v58  ;;  %v2460_v31 = vsub.f32 %v833_v42, %v925_v58 }
 0x2a7   :  { %v2462_v3 = vsub.f32 %v836_v25, %v925_v58  ;;  %v934_v16 = vmul.f32 %v2447_v36, %v2447_v36  ;;  %v935_v18 = vmul.f32 %v2450_v37, %v2450_v37  ;;  %v865_v53 = vmul.f32 %v2430_v52, %v2430_v52 }
 0x2a8   :  { %v870_v40 = vadd.f32 %v869_v48, %v863_v17  ;;  %v936_v24 = vmul.f32 %v2452_v23, %v2452_v23  ;;  %v866_v19 = vmul.f32 %v2432_v60, %v2432_v60  ;;  %v937_v11 = vmul.f32 %v2454_v38, %v2454_v38 }
 0x2a9   :  { %v942_v32 = vadd.f32 %v935_v18, %v934_v16  ;;  %v867_v42 = vmul.f32 %v2434_v63, %v2434_v63  ;;  %v938_v43 = vmul.f32 %v2456_v0, %v2456_v0  ;;  %v868_v25 = vmul.f32 %v2436_v34, %v2436_v34  ;;  %v883_v18 = vld [vmem:[%s2734_s5 + $0x1] sm:$0x1] }
 0x2aa   :  { %v871_v33 = vadd.f32 %v870_v40, %v864_v28  ;;  %v939_v7 = vmul.f32 %v2458_v39, %v2458_v39  ;;  %v940_v14 = vmul.f32 %v2460_v31, %v2460_v31  ;;  %v941_v47 = vmul.f32 %v2462_v3, %v2462_v3 }
 0x2ab   :  { %v943_v22 = vadd.f32 %v942_v32, %v936_v24  ;;  %v956_v24 = vld [vmem:[%s2735_s6 + $0x1] sm:$0x1] }
 0x2ac   :  { %v872_v20 = vadd.f32 %v871_v33, %v865_v53 }
 0x2ad   :  { %v944_v6 = vadd.f32 %v943_v22, %v937_v11 }
 0x2ae   :  { %v873_v5 = vadd.f32 %v872_v20, %v866_v19 }
 0x2af   :  { %v945_v8 = vadd.f32 %v944_v6, %v938_v43 }
 0x2b0   :  { %v874_v26 = vadd.f32 %v873_v5, %v867_v42 }
 0x2b1   :  { %v946_v45 = vadd.f32 %v945_v8, %v939_v7 }
 0x2b2   :  { %v875_v10 = vadd.f32 %v874_v26, %v868_v25 }
 0x2b3   :  { %v947_v44 = vadd.f32 %v946_v45, %v940_v14 }
 0x2b4   :  { %v876_v46 = vrot.slane %v875_v10, 4 }
 0x2b5   :  { %v948_v51 = vadd.f32 %v947_v44, %v941_v47 }
 0x2b6   :  { %v877_v50 = vadd.f32 %v876_v46, %v875_v10 }
 0x2b7   :  { %v949_v49 = vrot.slane %v948_v51, 4 }
 0x2b8   :  { %v878_v2 = vrot.slane %v877_v50, 2 }
 0x2b9   :  { %v950_v13 = vadd.f32 %v949_v49, %v948_v51 }
 0x2ba   :  { %v879_v59 = vadd.f32 %v878_v2, %v877_v50 }
 0x2bb   :  { %v951_v57 = vrot.slane %v950_v13, 2 }
 0x2bc   :  { %v880_v15 = vrot.slane %v879_v59, 1 }
 0x2bd   :  { %v952_v35 = vadd.f32 %v951_v57, %v950_v13 }
 0x2be   :  { %v881_v58 = vadd.f32 %v880_v15, %v879_v59 }
 0x2bf   :  { %v953_v17 = vrot.slane %v952_v35, 1 }
 0x2c0   :  { %v882_v9 = vmul.f32 0.015625, %v881_v58 }
 0x2c1   :  { %v954_v48 = vadd.f32 %v953_v17, %v952_v35 }
 0x2c2   :  { %v884_v28 = vadd.f32 1e-05, %v882_v9 }
 0x2c3   :  { %v955_v40 = vmul.f32 0.015625, %v954_v48 }
 0x2c4   :  { %1959 = vrsqrt.f32 %v884_v28 }
 0x2c5   :  { %v957_v16 = vadd.f32 1e-05, %v955_v40 }
 0x2c7   :  { %1961 = vrsqrt.f32 %v957_v16 }
 0x2ce   :  { %v1960_v53 = vpop.eup %1959 }
 0x2cf   :  { %v886_v33 = vmul.f32 %v1960_v53, %v883_v18 }
 0x2d1   :  { %v890_v32 = vrot.slane %v886_v33, %v2325_v61  ;;  %v1962_v19 = vpop.eup %1961  ;;  %v1613_v33 = vld [vmem:[%s2736_s7 + $0x1] ss:$0 sm:$0xff] }
 0x2d2   :  { %v959_v42 = vmul.f32 %v1962_v19, %v956_v24 }
 0x2d3   :  { %v2496_v20 = vmul.f32 %v890_v32, %v2426_v1  ;;  %v2499_v11 = vmul.f32 %v890_v32, %v2428_v56  ;;  %v2502_v22 = vmul.f32 %v890_v32, %v2432_v60  ;;  %v2505_v5 = vmul.f32 %v890_v32, %v2422_v54  ;;  %v1614_v56 = vld [vmem:[%s2737_s8 + $0x1] ss:$0 sm:$0xff] }
 0x2d4   :  { %v2508_v43 = vmul.f32 %v890_v32, %v2424_v55  ;;  %v2511_v6 = vmul.f32 %v890_v32, %v2430_v52  ;;  %v2514_v25 = vmul.f32 %v890_v32, %v2434_v63  ;;  %v963_v1 = vrot.slane %v959_v42, %v2325_v61 }
 0x2d5   :  { %v2521_v60 = vmul.f32 %v890_v32, %v2436_v34  ;;  %v906_v24 = vadd.f32 %v1613_v33, %v2496_v20  ;;  %v907_v19 = vadd.f32 %v1613_v33, %v2499_v11 }
 0x2d6   :  { %v964_v54 = vmul.f32 %v963_v1, %v2447_v36  ;;  %v965_v55 = vmul.f32 %v963_v1, %v2450_v37  ;;  %v966_v26 = vmul.f32 %v963_v1, %v2452_v23  ;;  %v967_v52 = vmul.f32 %v963_v1, %v2454_v38 }
 0x2d7   :  { %v968_v63 = vmul.f32 %v963_v1, %v2456_v0  ;;  %v969_v7 = vmul.f32 %v963_v1, %v2458_v39  ;;  %v970_v8 = vmul.f32 %v963_v1, %v2460_v31  ;;  %v971_v10 = vmul.f32 %v963_v1, %v2462_v3 }
 0x2d8   :  { %v979_v14 = vadd.f32 %v1614_v56, %v966_v26  ;;  %v980_v45 = vadd.f32 %v1614_v56, %v967_v52  ;;  %v977_v44 = vadd.f32 %v1614_v56, %v964_v54  ;;  %v978_v23 = vadd.f32 %v1614_v56, %v965_v55 }
 0x2d9   :  { %v981_v34 = vadd.f32 %v1614_v56, %v968_v63  ;;  %v982_v46 = vadd.f32 %v1614_v56, %v969_v7  ;;  %v983_v47 = vadd.f32 %v1614_v56, %v970_v8  ;;  %v984_v36 = vadd.f32 %v1614_v56, %v971_v10 }
 0x2da   :  { %v1617_v37 = vmul.f32 -1.442695, %v979_v14  ;;  %v1618_v50 = vmul.f32 -1.442695, %v980_v45  ;;  %v1615_v31 = vmul.f32 -1.442695, %v977_v44  ;;  %v908_v56 = vadd.f32 %v1613_v33, %v2511_v6 }
 0x2db   :  { %v1619_v51 = vmul.f32 -1.442695, %v981_v34  ;;  %v1620_v38 = vmul.f32 -1.442695, %v982_v46  ;;  %v1621_v0 = vmul.f32 -1.442695, %v983_v47  ;;  %v909_v55 = vadd.f32 %v1613_v33, %v2502_v22 }
 0x2dc   :  { %1963 = vpow2.f32 %v1617_v37  ;;  %v1622_v39 = vmul.f32 -1.442695, %v984_v36  ;;  %v1616_v3 = vmul.f32 -1.442695, %v978_v23  ;;  %v910_v7 = vadd.f32 %v1613_v33, %v2514_v25 }
 0x2dd   :  { %1965 = vpow2.f32 %v1618_v50  ;;  %v911_v14 = vadd.f32 %v1613_v33, %v2521_v60  ;;  %v904_v45 = vadd.f32 %v1613_v33, %v2505_v5  ;;  %v905_v46 = vadd.f32 %v1613_v33, %v2508_v43 }
 0x2de   :  { %1967 = vpow2.f32 %v1619_v51  ;;  %v1623_v51 = vld [vmem:[%s2732_s3 + $0x2] ss:$0 sm:$0xff] }
 0x2df   :  { %1969 = vpow2.f32 %v1620_v38  ;;  %v1632_v38 = vld [vmem:[%s2733_s4 + $0x2] ss:$0 sm:$0xff] }
 0x2e0   :  { %1971 = vpow2.f32 %v1621_v0 }
 0x2e1   :  { %1973 = vpow2.f32 %v1622_v39 }
 0x2e2   :  { %1975 = vpow2.f32 %v1615_v31 }
 0x2e3   :  { %1977 = vpow2.f32 %v1616_v3 }
 0x2e6   :  { %v1964_v2 = vpop.eup %1963 }
 0x2e7   :  { %v1966_v49 = vpop.eup %1965  ;;  %v1011_v59 = vadd.f32 1.0, %v1964_v2 }
 0x2e8   :  { %v1968_v13 = vpop.eup %1967  ;;  %v1012_v15 = vadd.f32 1.0, %v1966_v49 }
 0x2e9   :  { %v1970_v57 = vpop.eup %1969  ;;  %1979 = vrcp.f32 %v1011_v59  ;;  %v1013_v58 = vadd.f32 1.0, %v1968_v13 }
 0x2ea   :  { %v1972_v35 = vpop.eup %1971  ;;  %v1014_v9 = vadd.f32 1.0, %v1970_v57  ;;  %1981 = vrcp.f32 %v1012_v15 }
 0x2eb   :  { %v1974_v17 = vpop.eup %1973  ;;  %1983 = vrcp.f32 %v1013_v58  ;;  %v1015_v28 = vadd.f32 1.0, %v1972_v35 }
 0x2ec   :  { %v1976_v48 = vpop.eup %1975  ;;  %1985 = vrcp.f32 %v1014_v9  ;;  %v1016_v40 = vadd.f32 1.0, %v1974_v17 }
 0x2ed   :  { %v1978_v16 = vpop.eup %1977  ;;  %v1009_v18 = vadd.f32 1.0, %v1976_v48  ;;  %1987 = vrcp.f32 %v1015_v28 }
 0x2ee   :  { %v1010_v53 = vadd.f32 1.0, %v1978_v16  ;;  %1989 = vrcp.f32 %v1016_v40 }
 0x2ef   :  { %1991 = vrcp.f32 %v1009_v18 }
 0x2f0   :  { %1993 = vrcp.f32 %v1010_v53 }
 0x2f3   :  { %v1980_v32 = vpop.eup %1979 }
 0x2f4   :  { %v1982_v42 = vpop.eup %1981  ;;  %v1035_v1 = vmul.f32 %v1980_v32, %v906_v24 }
 0x2f5   :  { %v1984_v54 = vpop.eup %1983  ;;  %v1036_v26 = vmul.f32 %v1982_v42, %v907_v19 }
 0x2f6   :  { %v1986_v52 = vpop.eup %1985  ;;  %v1037_v63 = vmul.f32 %v1984_v54, %v908_v56  ;;  %v2543_v22 = vadd.f32 %v1035_v1, %v2379_v27 }
 0x2f7   :  { %v1988_v8 = vpop.eup %1987  ;;  %v1038_v10 = vmul.f32 %v1986_v52, %v909_v55  ;;  %v2546_v44 = vadd.f32 %v1036_v26, %v2382_v41 }
 0x2f8   :  { %v1990_v20 = vpop.eup %1989  ;;  %v1039_v11 = vmul.f32 %v1988_v8, %v910_v7  ;;  %v2555_v5 = vadd.f32 %v1037_v63, %v2391_v29 }
 0x2f9   :  { %v1992_v34 = vpop.eup %1991  ;;  %v1040_v6 = vmul.f32 %v1990_v20, %v911_v14  ;;  %v2558_v43 = vadd.f32 %v1038_v10, %v2394_v30  ;;  %v1050_v27 = vpack.c.bf16 %v2546_v44, %v2543_v22 }
 0x2fa   :  { %v1994_v47 = vpop.eup %1993  ;;  %v1033_v36 = vmul.f32 %v1992_v34, %v904_v45 }
 0x2fb   :  { %v1034_v25 = vmul.f32 %v1994_v47, %v905_v46  ;;  %v2570_v29 = vadd.f32 %v1040_v6, %v2406_v21 }
 0x2fc   :  { %v2549_v37 = vadd.f32 %v1033_v36, %v2385_v4  ;;  %v1051_v4 = vpack.c.bf16 %v2558_v43, %v2555_v5 }
 0x2fd   :  { %v2552_v60 = vadd.f32 %v1034_v25, %v2388_v62  ;;  %v2567_v62 = vadd.f32 %v1039_v11, %v2403_v12 }
 0x2ff   :  { %v1049_v41 = vpack.c.bf16 %v2552_v60, %v2549_v37  ;;  %v1052_v30 = vpack.c.bf16 %v2570_v29, %v2567_v62 }
 0x301   :  { %1835 = vmatprep.mubr.bf16.mxu0 %v1049_v41  ;;  %1859 = vmatprep.mubr.bf16.mxu1 %v1049_v41 }
 0x302   :  { %1836 = vmatmul.mubr.bf16.vlgmr.msra.gmra.mrb[16].mxu0 %v1050_v27  ;;  %1860 = vmatmul.mubr.bf16.vlgmr.msra.gmra.mrb[16].mxu1 %v1050_v27 }
 0x303   :  { %1839 = vmatprep.mubr.bf16.mxu0 %v1051_v4  ;;  %1863 = vmatprep.mubr.bf16.mxu1 %v1051_v4 }
 0x30a   :  { %1840 = vmatmul.mubr.bf16.gmra.mrb[20].mxu0 %v1052_v30  ;;  %1864 = vmatmul.mubr.bf16.gmra.mrb[20].mxu1 %v1052_v30 }
 0x3d5   :  { %v1837_v50 = vpop.f32.mrb[16].mxu0  ;;  %v1861_v23 = vpop.f32.mrb[16].mxu1 }
 0x3d6   :  { %v1174_v12 = vpop.f32.mrb[17].mxu0  ;;  %v1292_v0 = vpop.f32.mrb[17].mxu1  ;;  %v1183_v15 = vadd.f32 %v1837_v50, %v1623_v51  ;;  %v1301_v57 = vadd.f32 %v1861_v23, %v1632_v38 }
 0x3d7   :  { %v1838_v39 = vpop.f32.mrb[18].mxu0  ;;  %v1862_v21 = vpop.f32.mrb[18].mxu1  ;;  %v1175_v2 = vadd.f32 %v1623_v51, %v1174_v12  ;;  %v2580_v49 = vadd.f32 %v1632_v38, %v1292_v0 }
 0x3d8   :  { %v1177_v31 = vpop.f32.mrb[19].mxu0  ;;  %v1295_v3 = vpop.f32.mrb[19].mxu1  ;;  %v1186_v9 = vadd.f32 %v1838_v39, %v1623_v51  ;;  %v1304_v17 = vadd.f32 %v1862_v21, %v1632_v38 }
 0x3d9   :  { %v1178_v59 = vadd.f32 %v1623_v51, %v1177_v31  ;;  %v2582_v13 = vadd.f32 %v1632_v38, %v1295_v3 }
 0x3db   :  { %v1323_v58 = vadd.f32 %v1178_v59, %v1175_v2  ;;  %v1396_v35 = vadd.f32 %v2582_v13, %v2580_v49 }
 0x3dd   :  { %v1324_v28 = vadd.f32 %v1323_v58, %v1183_v15  ;;  %v1397_v48 = vadd.f32 %v1396_v35, %v1301_v57  ;;  %v1841_v40 = vpop.f32.mrb[20].mxu0  ;;  %v1865_v16 = vpop.f32.mrb[20].mxu1 }
 0x3de   :  { %v1190_v18 = vpop.f32.mrb[21].mxu0  ;;  %v1308_v53 = vpop.f32.mrb[21].mxu1  ;;  %v1199_v7 = vadd.f32 %v1841_v40, %v1623_v51  ;;  %v1317_v8 = vadd.f32 %v1865_v16, %v1632_v38 }
 0x3df   :  { %v1191_v33 = vadd.f32 %v1623_v51, %v1190_v18  ;;  %v1325_v24 = vadd.f32 %v1324_v28, %v1186_v9  ;;  %v1309_v32 = vadd.f32 %v1632_v38, %v1308_v53  ;;  %v1398_v19 = vadd.f32 %v1397_v48, %v1304_v17  ;;  %v1842_v42 = vpop.f32.mrb[22].mxu0  ;;  %v1866_v1 = vpop.f32.mrb[22].mxu1 }
 0x3e0   :  { %v1193_v56 = vpop.f32.mrb[23].mxu0  ;;  %v1311_v54 = vpop.f32.mrb[23].mxu1  ;;  %v1202_v20 = vadd.f32 %v1842_v42, %v1623_v51  ;;  %v1320_v45 = vadd.f32 %v1866_v1, %v1632_v38 }
 0x3e1   :  { %v1326_v55 = vadd.f32 %v1325_v24, %v1191_v33  ;;  %v1399_v26 = vadd.f32 %v1398_v19, %v1309_v32  ;;  %v1194_v52 = vadd.f32 %v1623_v51, %v1193_v56  ;;  %v1312_v63 = vadd.f32 %v1632_v38, %v1311_v54 }
 0x3e3   :  { %v1327_v10 = vadd.f32 %v1326_v55, %v1194_v52  ;;  %v1400_v14 = vadd.f32 %v1399_v26, %v1312_v63 }
 0x3e5   :  { %v1328_v11 = vadd.f32 %v1327_v10, %v1199_v7  ;;  %v1401_v34 = vadd.f32 %v1400_v14, %v1317_v8 }
 0x3e7   :  { %v1329_v46 = vadd.f32 %v1328_v11, %v1202_v20  ;;  %v1402_v6 = vadd.f32 %v1401_v34, %v1320_v45 }
 0x3e9   :  { %v1330_v47 = vrot.slane %v1329_v46, 4  ;;  %v1403_v36 = vrot.slane %v1402_v6, 4 }
 0x3eb   :  { %v1331_v25 = vadd.f32 %v1330_v47, %v1329_v46  ;;  %v1404_v27 = vadd.f32 %v1403_v36, %v1402_v6 }
 0x3ed   :  { %v1332_v41 = vrot.slane %v1331_v25, 2  ;;  %v1405_v4 = vrot.slane %v1404_v27, 2 }
 0x3ef   :  { %v1333_v30 = vadd.f32 %v1332_v41, %v1331_v25  ;;  %v1406_v50 = vadd.f32 %v1405_v4, %v1404_v27 }
 0x3f1   :  { %v1334_v23 = vrot.slane %v1333_v30, 1  ;;  %v1407_v12 = vrot.slane %v1406_v50, 1 }
 0x3f3   :  { %v1335_v0 = vadd.f32 %v1334_v23, %v1333_v30  ;;  %v1408_v39 = vadd.f32 %v1407_v12, %v1406_v50 }
 0x3f5   :  { %v1336_v21 = vmul.f32 0.015625, %v1335_v0  ;;  %v1409_v31 = vmul.f32 0.015625, %v1408_v39 }
 0x3f7   :  { %v2586_v51 = vsub.f32 %v1175_v2, %v1336_v21  ;;  %v2588_v38 = vsub.f32 %v1178_v59, %v1336_v21  ;;  %v2590_v3 = vsub.f32 %v1183_v15, %v1336_v21  ;;  %v2592_v58 = vsub.f32 %v1186_v9, %v1336_v21 }
 0x3f8   :  { %v2594_v35 = vsub.f32 %v1191_v33, %v1336_v21  ;;  %v2596_v28 = vsub.f32 %v1194_v52, %v1336_v21  ;;  %v2598_v48 = vsub.f32 %v1199_v7, %v1336_v21  ;;  %v2600_v40 = vsub.f32 %v1202_v20, %v1336_v21 }
 0x3f9   :  { %v1345_v16 = vmul.f32 %v2586_v51, %v2586_v51  ;;  %v1346_v2 = vmul.f32 %v2588_v38, %v2588_v38  ;;  %v1347_v59 = vmul.f32 %v2590_v3, %v2590_v3  ;;  %v1348_v15 = vmul.f32 %v2592_v58, %v2592_v58 }
 0x3fa   :  { %v2611_v18 = vsub.f32 %v2580_v49, %v1409_v31  ;;  %v2614_v53 = vsub.f32 %v2582_v13, %v1409_v31  ;;  %v2616_v33 = vsub.f32 %v1301_v57, %v1409_v31  ;;  %v2618_v24 = vsub.f32 %v1304_v17, %v1409_v31 }
 0x3fb   :  { %v1353_v9 = vadd.f32 %v1346_v2, %v1345_v16  ;;  %v2620_v19 = vsub.f32 %v1309_v32, %v1409_v31  ;;  %v2622_v42 = vsub.f32 %v1312_v63, %v1409_v31  ;;  %v2624_v1 = vsub.f32 %v1317_v8, %v1409_v31 }
 0x3fc   :  { %v2626_v54 = vsub.f32 %v1320_v45, %v1409_v31  ;;  %v1418_v49 = vmul.f32 %v2611_v18, %v2611_v18  ;;  %v1419_v13 = vmul.f32 %v2614_v53, %v2614_v53  ;;  %v1349_v57 = vmul.f32 %v2594_v35, %v2594_v35 }
 0x3fd   :  { %v1354_v56 = vadd.f32 %v1353_v9, %v1347_v59  ;;  %v1420_v32 = vmul.f32 %v2616_v33, %v2616_v33  ;;  %v1350_v26 = vmul.f32 %v2596_v28, %v2596_v28  ;;  %v1421_v63 = vmul.f32 %v2618_v24, %v2618_v24 }
 0x3fe   :  { %v1426_v55 = vadd.f32 %v1419_v13, %v1418_v49  ;;  %v1351_v8 = vmul.f32 %v2598_v48, %v2598_v48  ;;  %v1422_v14 = vmul.f32 %v2620_v19, %v2620_v19  ;;  %v1352_v45 = vmul.f32 %v2600_v40, %v2600_v40  ;;  %v1367_v13 = vld [vmem:[%s2734_s5 + $0x2] sm:$0x1] }
 0x3ff   :  { %v1355_v17 = vadd.f32 %v1354_v56, %v1348_v15  ;;  %v1423_v34 = vmul.f32 %v2622_v42, %v2622_v42  ;;  %v1424_v47 = vmul.f32 %v2624_v1, %v2624_v1  ;;  %v1425_v27 = vmul.f32 %v2626_v54, %v2626_v54 }
 0x400   :  { %v1427_v7 = vadd.f32 %v1426_v55, %v1420_v32 }
 0x401   :  { %v1356_v52 = vadd.f32 %v1355_v17, %v1349_v57 }
 0x402   :  { %v1428_v20 = vadd.f32 %v1427_v7, %v1421_v63 }
 0x403   :  { %v1357_v10 = vadd.f32 %v1356_v52, %v1350_v26 }
 0x404   :  { %v1429_v46 = vadd.f32 %v1428_v20, %v1422_v14 }
 0x405   :  { %v1358_v11 = vadd.f32 %v1357_v10, %v1351_v8 }
 0x406   :  { %v1430_v36 = vadd.f32 %v1429_v46, %v1423_v34 }
 0x407   :  { %v1359_v6 = vadd.f32 %v1358_v11, %v1352_v45 }
 0x408   :  { %v1431_v41 = vadd.f32 %v1430_v36, %v1424_v47 }
 0x409   :  { %v1360_v25 = vrot.slane %v1359_v6, 4 }
 0x40a   :  { %v1432_v30 = vadd.f32 %v1431_v41, %v1425_v27 }
 0x40b   :  { %v1361_v4 = vadd.f32 %v1360_v25, %v1359_v6 }
 0x40c   :  { %v1433_v23 = vrot.slane %v1432_v30, 4 }
 0x40d   :  { %v1362_v50 = vrot.slane %v1361_v4, 2 }
 0x40e   :  { %v1434_v0 = vadd.f32 %v1433_v23, %v1432_v30 }
 0x40f   :  { %v1363_v12 = vadd.f32 %v1362_v50, %v1361_v4 }
 0x410   :  { %v1435_v21 = vrot.slane %v1434_v0, 2 }
 0x411   :  { %v1364_v39 = vrot.slane %v1363_v12, 1 }
 0x412   :  { %v1436_v16 = vadd.f32 %v1435_v21, %v1434_v0 }
 0x413   :  { %v1365_v31 = vadd.f32 %v1364_v39, %v1363_v12 }
 0x414   :  { %v1437_v59 = vrot.slane %v1436_v16, 1 }
 0x415   :  { %v1366_v2 = vmul.f32 0.015625, %v1365_v31 }
 0x416   :  { %v1438_v9 = vadd.f32 %v1437_v59, %v1436_v16 }
 0x417   :  { %v1368_v15 = vadd.f32 1e-05, %v1366_v2 }
 0x418   :  { %v1439_v56 = vmul.f32 0.015625, %v1438_v9 }
 0x419   :  { %1995 = vrsqrt.f32 %v1368_v15 }
 0x41a   :  { %v1441_v49 = vadd.f32 1e-05, %v1439_v56 }
 0x41c   :  { %1997 = vrsqrt.f32 %v1441_v49 }
 0x423   :  { %v1996_v57 = vpop.eup %1995 }
 0x424   :  { %v1370_v17 = vmul.f32 %v1996_v57, %v1367_v13  ;;  %v1641_v57 = vld [vmem:[%s2736_s7 + $0x2] ss:$0 sm:$0xff]  ;;  %s2132_s7 = smov [#allocation8]  }
 0x425   :  { %s1554_s14 = sshll.u32 %s2132_s7, 4  ;;  %s1555_s14 = int_to_ptr.vmem [resolvable:$true] %s1554_s14 }
 0x426   :  { %v1374_v32 = vrot.slane %v1370_v17, %v2325_v61  ;;  %v1998_v7 = vpop.eup %1997  ;;  %s2097_s15 = scalar_lea.vmem %s1555_s14, 1024  ;;  %p2102_p11 = scmp.lt.s32.totalorder %s1555_s14, %s1555_s14 }
 0x427   :  { %p2098_p10 = scmp.ne.s32.totalorder %s1555_s14, %s2097_s15  ;;  %p2103_p12 = scmp.lt.s32.totalorder %s2097_s15, %s2097_s15 }
 0x428   :  { %v2657_v55 = vmul.f32 %v1374_v32, %v2586_v51  ;;  %v2660_v26 = vmul.f32 %v1374_v32, %v2588_v38  ;;  %v2663_v52 = vmul.f32 %v1374_v32, %v2590_v3  ;;  %v2666_v63 = vmul.f32 %v1374_v32, %v2592_v58  ;;  %v1440_v38 = vld [vmem:[%s2735_s6 + $0x2] sm:$0x1] }
 0x429   :  { %v2669_v8 = vmul.f32 %v1374_v32, %v2594_v35  ;;  %v2672_v10 = vmul.f32 %v1374_v32, %v2596_v28  ;;  %v2675_v14 = vmul.f32 %v1374_v32, %v2598_v48  ;;  %v2678_v51 = vmul.f32 %v1374_v32, %v2600_v40  ;;  %v1642_v35 = vld [vmem:[%s2737_s8 + $0x2] ss:$0 sm:$0xff]  ;;  %p2104_p13 = por %p2103_p12, %p2102_p11 }
 0x42a   :  { %v1443_v3 = vmul.f32 %v1998_v7, %v1440_v38  ;;  %v1388_v17 = vadd.f32 %v1641_v57, %v2657_v55  ;;  %v1389_v7 = vadd.f32 %v1641_v57, %v2660_v26 }
 0x42b   :  { %v1393_v55 = vadd.f32 %v1641_v57, %v2672_v10  ;;  %p2105_p0 = pnand %p2104_p13, %p2098_p10 }
 0x42c   :  { %v1447_v58 = vrot.slane %v1443_v3, %v2325_v61  ;;  %v1390_v3 = vadd.f32 %v1641_v57, %v2663_v52  ;;  %v1394_v52 = vadd.f32 %v1641_v57, %v2675_v14 }
 0x42e   :  { %v1448_v28 = vmul.f32 %v1447_v58, %v2611_v18  ;;  %v1449_v20 = vmul.f32 %v1447_v58, %v2614_v53  ;;  %v1450_v48 = vmul.f32 %v1447_v58, %v2616_v33  ;;  %v1451_v40 = vmul.f32 %v1447_v58, %v2618_v24 }
 0x42f   :  { %v1452_v45 = vmul.f32 %v1447_v58, %v2620_v19  ;;  %v1453_v11 = vmul.f32 %v1447_v58, %v2622_v42  ;;  %v1454_v34 = vmul.f32 %v1447_v58, %v2624_v1  ;;  %v1455_v61 = vmul.f32 %v1447_v58, %v2626_v54 }
 0x430   :  { %v1461_v46 = vadd.f32 %v1642_v35, %v1448_v28  ;;  %v1462_v6 = vadd.f32 %v1642_v35, %v1449_v20  ;;  %v1463_v47 = vadd.f32 %v1642_v35, %v1450_v48  ;;  %v1464_v36 = vadd.f32 %v1642_v35, %v1451_v40 }
 0x431   :  { %v1465_v25 = vadd.f32 %v1642_v35, %v1452_v45  ;;  %v1466_v18 = vadd.f32 %v1642_v35, %v1453_v11  ;;  %v1467_v27 = vadd.f32 %v1642_v35, %v1454_v34  ;;  %v1468_v4 = vadd.f32 %v1642_v35, %v1455_v61 }
 0x432   :  { %v1643_v53 = vmul.f32 -1.442695, %v1461_v46  ;;  %v1644_v41 = vmul.f32 -1.442695, %v1462_v6  ;;  %v1645_v33 = vmul.f32 -1.442695, %v1463_v47  ;;  %v1391_v28 = vadd.f32 %v1641_v57, %v2666_v63 }
 0x433   :  { %v1646_v24 = vmul.f32 -1.442695, %v1464_v36  ;;  %v1647_v19 = vmul.f32 -1.442695, %v1465_v25  ;;  %v1648_v42 = vmul.f32 -1.442695, %v1466_v18  ;;  %v1392_v40 = vadd.f32 %v1641_v57, %v2669_v8 }
 0x434   :  { %1999 = vpow2.f32 %v1643_v53  ;;  %v1649_v1 = vmul.f32 -1.442695, %v1467_v27  ;;  %v1650_v54 = vmul.f32 -1.442695, %v1468_v4  ;;  %v1395_v25 = vadd.f32 %v1641_v57, %v2678_v51 }
 0x435   :  { %2001 = vpow2.f32 %v1644_v41 }
 0x436   :  { %2003 = vpow2.f32 %v1645_v33 }
 0x437   :  { %2005 = vpow2.f32 %v1646_v24 }
 0x438   :  { %2007 = vpow2.f32 %v1647_v19 }
 0x439   :  { %2009 = vpow2.f32 %v1648_v42 }
 0x43a   :  { %2011 = vpow2.f32 %v1649_v1 }
 0x43b   :  { %2013 = vpow2.f32 %v1650_v54 }
 0x43e   :  { %v2000_v30 = vpop.eup %1999 }
 0x43f   :  { %v2002_v50 = vpop.eup %2001  ;;  %v1493_v23 = vadd.f32 1.0, %v2000_v30 }
 0x440   :  { %v2004_v12 = vpop.eup %2003  ;;  %v1494_v0 = vadd.f32 1.0, %v2002_v50 }
 0x441   :  { %v2006_v39 = vpop.eup %2005  ;;  %v1495_v21 = vadd.f32 1.0, %v2004_v12  ;;  %2015 = vrcp.f32 %v1493_v23 }
 0x442   :  { %v2008_v31 = vpop.eup %2007  ;;  %v1496_v16 = vadd.f32 1.0, %v2006_v39  ;;  %2017 = vrcp.f32 %v1494_v0 }
 0x443   :  { %v2010_v2 = vpop.eup %2009  ;;  %v1497_v59 = vadd.f32 1.0, %v2008_v31  ;;  %2019 = vrcp.f32 %v1495_v21 }
 0x444   :  { %v2012_v15 = vpop.eup %2011  ;;  %v1498_v9 = vadd.f32 1.0, %v2010_v2  ;;  %2021 = vrcp.f32 %v1496_v16 }
 0x445   :  { %v2014_v56 = vpop.eup %2013  ;;  %v1499_v49 = vadd.f32 1.0, %v2012_v15  ;;  %2023 = vrcp.f32 %v1497_v59 }
 0x446   :  { %v1500_v13 = vadd.f32 1.0, %v2014_v56  ;;  %2025 = vrcp.f32 %v1498_v9 }
 0x447   :  { %2027 = vrcp.f32 %v1499_v49 }
 0x448   :  { %2029 = vrcp.f32 %v1500_v13 }
 0x44b   :  { %v2016_v32 = vpop.eup %2015 }
 0x44c   :  { %v2018_v38 = vpop.eup %2017  ;;  %v1517_v58 = vmul.f32 %v2016_v32, %v1388_v17 }
 0x44d   :  { %v2020_v35 = vpop.eup %2019  ;;  %v1518_v20 = vmul.f32 %v2018_v38, %v1389_v7 }
 0x44e   :  { %v2022_v48 = vpop.eup %2021  ;;  %v1519_v45 = vmul.f32 %v2020_v35, %v1390_v3  ;;  %v1525_v11 = vadd.f32 %v1517_v58, %v2549_v37 }
 0x44f   :  { %v2024_v34 = vpop.eup %2023  ;;  %v1520_v61 = vmul.f32 %v2022_v48, %v1391_v28  ;;  %v1526_v26 = vadd.f32 %v1518_v20, %v2552_v60 }
 0x450   :  { %v2026_v46 = vpop.eup %2025  ;;  %v1521_v6 = vmul.f32 %v2024_v34, %v1392_v40  ;;  %v1527_v47 = vadd.f32 %v1519_v45, %v2543_v22  ;;  %v1533_v63 = vmul.f32 0.35355338, %v1525_v11 }
 0x451   :  { %v2028_v36 = vpop.eup %2027  ;;  %v1522_v8 = vmul.f32 %v2026_v46, %v1393_v55  ;;  %v1528_v18 = vadd.f32 %v1520_v61, %v2546_v44  ;;  %v1534_v37 = vmul.f32 0.35355338, %v1526_v26 }
 0x452   :  { %v2030_v27 = vpop.eup %2029  ;;  %v1523_v53 = vmul.f32 %v2028_v36, %v1394_v52  ;;  %v1529_v10 = vadd.f32 %v1521_v6, %v2555_v5  ;;  %v1535_v41 = vmul.f32 0.35355338, %v1527_v47  ;;  %1541 = vst [vmem:[#allocation8] sm:$0xff] %v1533_v63 }
 0x453   :  { %v1530_v60 = vadd.f32 %v1522_v8, %v2558_v43  ;;  %v1524_v14 = vmul.f32 %v2030_v27, %v1395_v25  ;;  %v1536_v33 = vmul.f32 0.35355338, %v1528_v18  ;;  %1542 = vst [vmem:[#allocation8 + $0x8] sm:$0xff] %v1534_v37 }
 0x454   :  { %v1531_v22 = vadd.f32 %v1523_v53, %v2567_v62  ;;  %v1537_v4 = vmul.f32 0.35355338, %v1529_v10  ;;  %1543 = vst [vmem:[#allocation8 + $0x10] sm:$0xff] %v1535_v41 }
 0x455   :  { %v1538_v51 = vmul.f32 0.35355338, %v1530_v60  ;;  %v1532_v44 = vadd.f32 %v1524_v14, %v2570_v29  ;;  %1544 = vst [vmem:[#allocation8 + $0x18] sm:$0xff] %v1536_v33 }
 0x456   :  { %v1539_v24 = vmul.f32 0.35355338, %v1531_v22  ;;  %1545 = vst [vmem:[#allocation8 + $0x20] sm:$0xff] %v1537_v4 }
 0x457   :  { %1546 = vst [vmem:[#allocation8 + $0x28] sm:$0xff] %v1538_v51  ;;  %v1540_v5 = vmul.f32 0.35355338, %v1532_v44 }
 0x458   :  { %1547 = vst [vmem:[#allocation8 + $0x30] sm:$0xff] %v1539_v24 }
 0x459   :  { %1548 = vst [vmem:[#allocation8 + $0x38] sm:$0xff] %v1540_v5 }
 0x45a   :  { %2108 = shalt.err (!%p2105_p0)
}
 0x45b   :  { %s2109_s18 = scalar_lea.hbm %s2738_s9, 1024 }
 0x45c   :  { %p2110_p1 = scmp.ne.s32.totalorder %s2738_s9, %s2109_s18  ;;  %p2113_p2 = scmp.lt.u32.totalorder %s2109_s18, %s2738_s9 }
 0x45e   :  { %p2115_p3 = pnand %p2113_p2, %p2110_p1 }
 0x460   :  { %2118 = shalt.err (!%p2115_p3)
}
 0x461   :  { %1560 = dma.vmem_to_hbm [thread:$0]  %s1555_s14, 1024, %s2738_s9, [#allocation4], %s2129_s1, %s2129_s1, %s2130_s10  }
 0x462   :  { %2123 = dma.done.wait [#allocation4], 1024  }
 0x463   :  { %2124 = vsyncadd [#allocation4], 4294966272 }
 0x464   :  { %1564 = vsyncpa [#allocation3], 1 }
 0x465   :  { %1565 = vsyncpa [#allocation6], 1 }
 0x466   :  { %1566 = vsyncpa [#allocation4], 1 }

</bundles_post_ra>
